<compile_context>
chip_gen: v7x
topology: tpu7x:2x2x1
jax: 0.10.0
libtpu: 0.0.40
codegen_flags: <defaults>
</compile_context>

<pallas_src>
import functools

import jax
import jax.numpy as jnp
from jax.experimental import pallas as pl
from jax.experimental.pallas import tpu as pltpu

_TR = 128   # node-row tile (sublane-aligned, lane-dense adjacency rows)
_F = 128    # padded feature / lane width


def _round_up(v, m):
    return (v + m - 1) // m * m


# ----------------------------------------------------------------------------
# Fused forward kernel.
#   grid = (num_layers + 1, N_pad // _TR)
#     axis 0 (outer, sequential): layer index l; l == num_layers is the Linear head
#     axis 1 (inner, sequential): node-row tile r of A_hat / the output
#   scratch:
#     h_scr : (N_pad, 128) f32  — running activation, resident across all layers
#     hw_scr: (N_pad, 128) bf16 — per-conv-layer feature transform h_{l-1} @ W_l
# ----------------------------------------------------------------------------
def _fused_gcn_kernel(adj_ref, x_ref, w_ref, b_ref, o_ref, h_scr, hw_scr):
    l = pl.program_id(0)
    r = pl.program_id(1)
    n_conv = pl.num_programs(0) - 1
    row = pl.multiple_of(r * _TR, _TR)

    # Stage the (padded) input features into the resident activation buffer.
    @pl.when((l == 0) & (r == 0))
    def _():
        h_scr[...] = x_ref[...]

    # Once per conv layer: feature transform hw = h_{l-1} @ W_l (bf16 MXU,
    # f32 accumulation, stored bf16 — it is only consumed as a bf16 operand).
    # h_scr rows may safely be overwritten by this layer's row tiles afterwards.
    @pl.when((r == 0) & (l < n_conv))
    def _():
        hw_scr[...] = jnp.dot(
            h_scr[...].astype(jnp.bfloat16),
            w_ref[0].astype(jnp.bfloat16),
            preferred_element_type=jnp.float32,
        ).astype(jnp.bfloat16)

    # GCN conv layers: aggregate one row tile with A_hat, add bias, ReLU.
    @pl.when(l < n_conv)
    def _():
        agg = jnp.dot(
            adj_ref[...],      # (TR, N_pad)  bf16
            hw_scr[...],       # (N_pad, 128) bf16
            preferred_element_type=jnp.float32,
        )
        h_scr[pl.ds(row, _TR), :] = jnp.maximum(agg + b_ref[0], 0.0)
        # TODO(synk): training-mode dropout (stateful PRNG) omitted; eval-mode
        # forward => dropout is the identity.

    # Linear classifier head (last grid "layer"): per row tile, straight from
    # the resident activation; full f32 accumulation + f32 bias, no ReLU.
    @pl.when(l == n_conv)
    def _():
        o_ref[...] = (
            jnp.dot(
                h_scr[pl.ds(row, _TR), :].astype(jnp.bfloat16),
                w_ref[0].astype(jnp.bfloat16),
                preferred_element_type=jnp.float32,
            )
            + b_ref[0]
        ).astype(o_ref.dtype)


@functools.partial(jax.jit, static_argnames=("num_nodes", "output_dim"))
def gcn_classifier_forward(adj_pad, x_pad, w_stack, b_stack, num_nodes, output_dim):
    n_pad = adj_pad.shape[0]
    n_stages = w_stack.shape[0]            # num_layers convs + 1 linear head
    last = n_stages - 1
    grid = (n_stages, n_pad // _TR)
    out = pl.pallas_call(
        _fused_gcn_kernel,
        out_shape=jax.ShapeDtypeStruct((n_pad, _F), jnp.float32),
        grid_spec=pltpu.PrefetchScalarGridSpec(
            num_scalar_prefetch=0,
            grid=grid,
            in_specs=[
                # A_hat row tile; the head stage does not touch A, so pin it to
                # tile 0 there instead of re-streaming the whole matrix.
                pl.BlockSpec((_TR, n_pad),
                             lambda l, r: (jnp.where(l == last, 0, r), 0)),
                pl.BlockSpec((n_pad, _F), lambda l, r: (0, 0)),      # x (resident)
                pl.BlockSpec((1, _F, _F), lambda l, r: (l, 0, 0)),   # W_l
                pl.BlockSpec((1, 1, _F), lambda l, r: (l, 0, 0)),    # b_l
            ],
            # Output tiles are only produced during the head stage: keep the
            # block index pinned at 0 for conv stages so the only HBM
            # write-backs are the final, fully written tiles.
            out_specs=pl.BlockSpec((_TR, _F),
                                   lambda l, r: (jnp.where(l == last, r, 0), 0)),
            scratch_shapes=[
                pltpu.VMEM((n_pad, _F), jnp.float32),    # h  (running activation)
                pltpu.VMEM((n_pad, _F), jnp.bfloat16),   # hw (per-layer transform)
            ],
        ),
        compiler_params=pltpu.CompilerParams(
            # Layer axis is inherently sequential; the row axis shares the
            # h/hw scratch within a layer, so it must also be "arbitrary".
            dimension_semantics=("arbitrary", "arbitrary"),
        ),
    )(adj_pad, x_pad, w_stack, b_stack)
    # Strip node and feature padding (padded bias entries are zero, padded
    # columns/rows are discarded here).
    return out[:num_nodes, :output_dim]


# ----------------------------------------------------------------------------
# One-time graph / parameter preparation (hoisted out of the forward hot path)
# ----------------------------------------------------------------------------
def normalized_adjacency(edge_index, num_nodes):
    """Dense A_hat = D^{-1/2} (A + I) D^{-1/2}.

    Note: degrees are the row sums of A[target, source] (in-degree incl. the
    self-loop); identical to PyG gcn_norm for undirected edge_index.
    """
    src, dst = edge_index[0], edge_index[1]
    loop = jnp.arange(num_nodes, dtype=edge_index.dtype)
    src = jnp.concatenate([src, loop])
    dst = jnp.concatenate([dst, loop])
    adj = jnp.zeros((num_nodes, num_nodes), jnp.float32).at[dst, src].add(1.0)
    deg = adj.sum(axis=1)
    dinv = jnp.where(deg > 0, jax.lax.rsqrt(deg), 0.0)
    return dinv[:, None] * adj * dinv[None, :]


def prepare_graph(edge_index, num_nodes):
    """Computed once per static graph: padded, bf16 A_hat."""
    adj = normalized_adjacency(edge_index, num_nodes)
    n_pad = _round_up(max(num_nodes, _TR), _TR)
    adj_pad = jnp.zeros((n_pad, n_pad), jnp.bfloat16)
    return adj_pad.at[:num_nodes, :num_nodes].set(adj.astype(jnp.bfloat16))


def pad_features(x):
    n, f = x.shape
    assert f <= _F, "input_dim must be <= 128 for this padding scheme"
    n_pad = _round_up(max(n, _TR), _TR)
    return jnp.zeros((n_pad, _F), jnp.float32).at[:n, :f].set(x)


def prepare_params(params):
    """Zero-pad every weight/bias to 128 lanes and stack convs + linear head."""
    n_conv = len(params["convs"])
    w_stack = jnp.zeros((n_conv + 1, _F, _F), jnp.float32)
    b_stack = jnp.zeros((n_conv + 1, 1, _F), jnp.float32)
    for l, (w, b) in enumerate(params["convs"]):
        w_stack = w_stack.at[l, : w.shape[0], : w.shape[1]].set(w)
        b_stack = b_stack.at[l, 0, : b.shape[0]].set(b)
    w_lin, b_lin = params["lin"]
    w_stack = w_stack.at[n_conv, : w_lin.shape[0], : w_lin.shape[1]].set(w_lin)
    b_stack = b_stack.at[n_conv, 0, : b_lin.shape[0]].set(b_lin)
    return w_stack, b_stack


def init_params(key, num_layers, input_dim, hidden_dim, output_dim):
    params = {"convs": [], "lin": None}
    dims = [input_dim] + [hidden_dim] * num_layers
    for l in range(num_layers):
        key, kw = jax.random.split(key)
        fan_in, fan_out = dims[l], dims[l + 1]
        scale = jnp.sqrt(6.0 / (fan_in + fan_out))
        w = jax.random.uniform(kw, (fan_in, fan_out), jnp.float32, -scale, scale)
        b = jnp.zeros((fan_out,), jnp.float32)
        params["convs"].append((w, b))
    key, kw, kb = jax.random.split(key, 3)
    bound = 1.0 / jnp.sqrt(hidden_dim)
    w_lin = jax.random.uniform(kw, (hidden_dim, output_dim), jnp.float32, -bound, bound)
    b_lin = jax.random.uniform(kb, (output_dim,), jnp.float32, -bound, bound)
    params["lin"] = (w_lin, b_lin)
    return params


# ----------------------------------------------------------------------------
# Pure-JAX reference (same bf16-operand / f32-accumulate recipe) for checking
# ----------------------------------------------------------------------------
def reference_forward(params, x, edge_index, num_nodes):
    adj = normalized_adjacency(edge_index, num_nodes).astype(jnp.bfloat16)
    h = x
    for (w, b) in params["convs"]:
        hw = jnp.dot(h.astype(jnp.bfloat16), w.astype(jnp.bfloat16),
                     preferred_element_type=jnp.float32)
        h = jnp.maximum(jnp.dot(adj, hw.astype(jnp.bfloat16),
                                preferred_element_type=jnp.float32) + b, 0.0)
    w_lin, b_lin = params["lin"]
    return jnp.dot(h.astype(jnp.bfloat16), w_lin.astype(jnp.bfloat16),
                   preferred_element_type=jnp.float32) + b_lin


if __name__ == "__main__":
    num_layers = 2
    num_nodes = 200        # "batch_size" in the module docstring = graph nodes
    input_dim = 16
    hidden_dim = 32
    output_dim = 4
    num_edges = 600

    key = jax.random.PRNGKey(0)
    key, kx, ke = jax.random.split(key, 3)
    x = jax.random.normal(kx, (num_nodes, input_dim), jnp.float32)
    edge_index = jax.random.randint(ke, (2, num_edges), 0, num_nodes, jnp.int32)

    params = init_params(key, num_layers, input_dim, hidden_dim, output_dim)

    # One-time graph / parameter preparation (amortized for static graphs).
    adj_pad = prepare_graph(edge_index, num_nodes)
    x_pad = pad_features(x)
    w_stack, b_stack = prepare_params(params)

    out = gcn_classifier_forward(adj_pad, x_pad, w_stack, b_stack,
                                 num_nodes, output_dim)
    out = jax.block_until_ready(out)

    ref = reference_forward(params, x, edge_index, num_nodes)
    assert out.shape == (num_nodes, output_dim)
    assert jnp.allclose(out, ref, atol=1e-3, rtol=1e-3), "mismatch vs reference"

    print("KERNEL_OK")
</pallas_src>

<mosaic_0001>
module attributes {stable_mosaic.version = 11 : i64} {
  func.func @_fused_gcn_kernel(%arg0: i32, %arg1: i32, %arg2: memref<128x256xbf16, #tpu.memory_space<vmem>>, %arg3: memref<256x128xf32, #tpu.memory_space<vmem>>, %arg4: memref<1x128x128xf32, #tpu.memory_space<vmem>>, %arg5: memref<1x1x128xf32, #tpu.memory_space<vmem>>, %arg6: memref<128x128xf32, #tpu.memory_space<vmem>>, %arg7: memref<256x128xf32, #tpu.memory_space<vmem>>, %arg8: memref<256x128xbf16, #tpu.memory_space<vmem>>) attributes {dimension_semantics = [#tpu.dimension_semantics<arbitrary>, #tpu.dimension_semantics<arbitrary>], iteration_bounds = array<i64: 3, 2>, scalar_prefetch = 0 : i64, scratch_operands = 2 : i64, tpu.core_type = #tpu.core_type<tc>, window_params = [{transform_indices = @transform_0, window_bounds = array<i64: 128, 256>}, {pipeline_mode = #tpu.pipeline_mode<synchronous>, transform_indices = @transform_1, window_bounds = array<i64: 256, 128>}, {transform_indices = @transform_2, window_bounds = array<i64: 1, 128, 128>}, {transform_indices = @transform_3, window_bounds = array<i64: 1, 1, 128>}, {transform_indices = @transform_4, window_bounds = array<i64: 128, 128>}]} {
    %c128_i32 = arith.constant 128 : i32
    %0 = arith.muli %arg1, %c128_i32 : i32
    %1 = tpu.assume_multiple %0, 128 : i32
    %c0_i32 = arith.constant 0 : i32
    %2 = arith.cmpi eq, %arg0, %c0_i32 : i32
    %c0_i32_0 = arith.constant 0 : i32
    %3 = arith.cmpi eq, %arg1, %c0_i32_0 : i32
    %4 = arith.andi %2, %3 : i1
    %5 = arith.extui %4 : i1 to i32
    %c0_i32_1 = arith.constant 0 : i32
    %6 = arith.cmpi ne, %5, %c0_i32_1 : i32
    scf.if %6 {
      %c0 = arith.constant 0 : index
      %c0_8 = arith.constant 0 : index
      %18 = vector.load %arg3[%c0, %c0_8] : memref<256x128xf32, #tpu.memory_space<vmem>>, vector<256x128xf32>
      %c0_9 = arith.constant 0 : index
      %c0_10 = arith.constant 0 : index
      %19 = vector.load %arg7[%c0_9, %c0_10] : memref<256x128xf32, #tpu.memory_space<vmem>>, vector<256x128xf32>
      tpu.vector_store %arg7[%c0_9, %c0_10], %18 {strides = array<i32>} : memref<256x128xf32, #tpu.memory_space<vmem>>, vector<256x128xf32>,
    } else {
    }
    %c0_i32_2 = arith.constant 0 : i32
    %7 = arith.cmpi eq, %arg1, %c0_i32_2 : i32
    %c2_i32 = arith.constant 2 : i32
    %8 = arith.cmpi slt, %arg0, %c2_i32 : i32
    %9 = arith.andi %7, %8 : i1
    %10 = arith.extui %9 : i1 to i32
    %c0_i32_3 = arith.constant 0 : i32
    %11 = arith.cmpi ne, %10, %c0_i32_3 : i32
    scf.if %11 {
      %c0 = arith.constant 0 : index
      %c0_8 = arith.constant 0 : index
      %18 = vector.load %arg7[%c0, %c0_8] : memref<256x128xf32, #tpu.memory_space<vmem>>, vector<256x128xf32>
      %19 = arith.truncf %18 : vector<256x128xf32> to vector<256x128xbf16>
      %c0_9 = arith.constant 0 : index
      %c0_10 = arith.constant 0 : index
      %c0_11 = arith.constant 0 : index
      %20 = vector.load %arg4[%c0_9, %c0_10, %c0_11] : memref<1x128x128xf32, #tpu.memory_space<vmem>>, vector<1x128x128xf32>
      %21 = vector.shape_cast %20 : vector<1x128x128xf32> to vector<128x128xf32>
      %22 = arith.truncf %21 : vector<128x128xf32> to vector<128x128xbf16>
      %cst = arith.constant dense<0.000000e+00> : vector<256x128xf32>
      %23 = tpu.matmul %19, %22, %cst {dimension_numbers = #tpu.dot_dimension_numbers<[1], [0], [0], [1], [0, 0, 1, 1], [], []>} : vector<256x128xbf16>, vector<128x128xbf16>, vector<256x128xf32> -> vector<256x128xf32>
      %24 = arith.truncf %23 : vector<256x128xf32> to vector<256x128xbf16>
      %c0_12 = arith.constant 0 : index
      %c0_13 = arith.constant 0 : index
      %25 = vector.load %arg8[%c0_12, %c0_13] : memref<256x128xbf16, #tpu.memory_space<vmem>>, vector<256x128xbf16>
      tpu.vector_store %arg8[%c0_12, %c0_13], %24 {strides = array<i32>} : memref<256x128xbf16, #tpu.memory_space<vmem>>, vector<256x128xbf16>,
    } else {
    }
    %c2_i32_4 = arith.constant 2 : i32
    %12 = arith.cmpi slt, %arg0, %c2_i32_4 : i32
    %13 = arith.extui %12 : i1 to i32
    %c0_i32_5 = arith.constant 0 : i32
    %14 = arith.cmpi ne, %13, %c0_i32_5 : i32
    scf.if %14 {
      %c0 = arith.constant 0 : index
      %c0_8 = arith.constant 0 : index
      %18 = vector.load %arg2[%c0, %c0_8] : memref<128x256xbf16, #tpu.memory_space<vmem>>, vector<128x256xbf16>
      %c0_9 = arith.constant 0 : index
      %c0_10 = arith.constant 0 : index
      %19 = vector.load %arg8[%c0_9, %c0_10] : memref<256x128xbf16, #tpu.memory_space<vmem>>, vector<256x128xbf16>
      %cst = arith.constant dense<0.000000e+00> : vector<128x128xf32>
      %20 = tpu.matmul %18, %19, %cst {dimension_numbers = #tpu.dot_dimension_numbers<[1], [0], [0], [1], [0, 0, 1, 1], [], []>} : vector<128x256xbf16>, vector<256x128xbf16>, vector<128x128xf32> -> vector<128x128xf32>
      %c0_11 = arith.constant 0 : index
      %c0_12 = arith.constant 0 : index
      %c0_13 = arith.constant 0 : index
      %21 = vector.load %arg5[%c0_11, %c0_12, %c0_13] : memref<1x1x128xf32, #tpu.memory_space<vmem>>, vector<1x1x128xf32>
      %22 = vector.shape_cast %21 : vector<1x1x128xf32> to vector<1x128xf32>
      %23 = vector.broadcast %22 : vector<1x128xf32> to vector<128x128xf32>
      %24 = arith.addf %20, %23 : vector<128x128xf32>
      %cst_14 = arith.constant 0.000000e+00 : f32
      %25 = vector.broadcast %cst_14 : f32 to vector<128x128xf32>
      %26 = arith.maximumf %24, %25 : vector<128x128xf32>
      %27 = arith.index_cast %1 : i32 to index
      %c0_15 = arith.constant 0 : index
      %28 = vector.load %arg7[%27, %c0_15] : memref<256x128xf32, #tpu.memory_space<vmem>>, vector<128x128xf32>
      tpu.vector_store %arg7[%27, %c0_15], %26 {strides = array<i32>} : memref<256x128xf32, #tpu.memory_space<vmem>>, vector<128x128xf32>,
    } else {
    }
    %c2_i32_6 = arith.constant 2 : i32
    %15 = arith.cmpi eq, %arg0, %c2_i32_6 : i32
    %16 = arith.extui %15 : i1 to i32
    %c0_i32_7 = arith.constant 0 : i32
    %17 = arith.cmpi ne, %16, %c0_i32_7 : i32
    scf.if %17 {
      %18 = arith.index_cast %1 : i32 to index
      %c0 = arith.constant 0 : index
      %19 = vector.load %arg7[%18, %c0] : memref<256x128xf32, #tpu.memory_space<vmem>>, vector<128x128xf32>
      %20 = arith.truncf %19 : vector<128x128xf32> to vector<128x128xbf16>
      %c0_8 = arith.constant 0 : index
      %c0_9 = arith.constant 0 : index
      %c0_10 = arith.constant 0 : index
      %21 = vector.load %arg4[%c0_8, %c0_9, %c0_10] : memref<1x128x128xf32, #tpu.memory_space<vmem>>, vector<1x128x128xf32>
      %22 = vector.shape_cast %21 : vector<1x128x128xf32> to vector<128x128xf32>
      %23 = arith.truncf %22 : vector<128x128xf32> to vector<128x128xbf16>
      %cst = arith.constant dense<0.000000e+00> : vector<128x128xf32>
      %24 = tpu.matmul %20, %23, %cst {dimension_numbers = #tpu.dot_dimension_numbers<[1], [0], [0], [1], [0, 0, 1, 1], [], []>} : vector<128x128xbf16>, vector<128x128xbf16>, vector<128x128xf32> -> vector<128x128xf32>
      %c0_11 = arith.constant 0 : index
      %c0_12 = arith.constant 0 : index
      %c0_13 = arith.constant 0 : index
      %25 = vector.load %arg5[%c0_11, %c0_12, %c0_13] : memref<1x1x128xf32, #tpu.memory_space<vmem>>, vector<1x1x128xf32>
      %26 = vector.shape_cast %25 : vector<1x1x128xf32> to vector<1x128xf32>
      %27 = vector.broadcast %26 : vector<1x128xf32> to vector<128x128xf32>
      %28 = arith.addf %24, %27 : vector<128x128xf32>
      %c0_14 = arith.constant 0 : index
      %c0_15 = arith.constant 0 : index
      %29 = vector.load %arg6[%c0_14, %c0_15] : memref<128x128xf32, #tpu.memory_space<vmem>>, vector<128x128xf32>
      tpu.vector_store %arg6[%c0_14, %c0_15], %28 {strides = array<i32>} : memref<128x128xf32, #tpu.memory_space<vmem>>, vector<128x128xf32>,
    } else {
    }
    return
  }
  func.func @transform_0(%arg0: i32, %arg1: i32) -> (i32, i32) {
    %c2_i32 = arith.constant 2 : i32
    %0 = arith.cmpi eq, %arg0, %c2_i32 : i32
    %c0_i32 = arith.constant 0 : i32
    %1 = arith.select %0, %c0_i32, %arg1 : i32
    %c0_i32_0 = arith.constant 0 : i32
    %c0_i32_1 = arith.constant 0 : i32
    return %1, %c0_i32_0 : i32, i32
  }
  func.func @transform_1(%arg0: i32, %arg1: i32) -> (i32, i32) {
    %c0_i32 = arith.constant 0 : i32
    %c0_i32_0 = arith.constant 0 : i32
    %c0_i32_1 = arith.constant 0 : i32
    return %c0_i32, %c0_i32_0 : i32, i32
  }
  func.func @transform_2(%arg0: i32, %arg1: i32) -> (i32, i32, i32) {
    %c0_i32 = arith.constant 0 : i32
    %c0_i32_0 = arith.constant 0 : i32
    %c0_i32_1 = arith.constant 0 : i32
    return %arg0, %c0_i32, %c0_i32_0 : i32, i32, i32
  }
  func.func @transform_3(%arg0: i32, %arg1: i32) -> (i32, i32, i32) {
    %c0_i32 = arith.constant 0 : i32
    %c0_i32_0 = arith.constant 0 : i32
    %c0_i32_1 = arith.constant 0 : i32
    return %arg0, %c0_i32, %c0_i32_0 : i32, i32, i32
  }
  func.func @transform_4(%arg0: i32, %arg1: i32) -> (i32, i32) {
    %c2_i32 = arith.constant 2 : i32
    %0 = arith.cmpi eq, %arg0, %c2_i32 : i32
    %c0_i32 = arith.constant 0 : i32
    %1 = arith.select %0, %arg1, %c0_i32 : i32
    %c0_i32_0 = arith.constant 0 : i32
    %c0_i32_1 = arith.constant 0 : i32
    return %1, %c0_i32_0 : i32, i32
  }
}

</mosaic_0001>

<bundles_post_ra>
// kernel: gcn_classifier_forward.1
= control target key start
LH: loop header
LB: loop body
LE: loop exit
PB: predicated region body
PF: predicated region fallthrough
CT: control target
= control target key end

     0   :  { %s2296_s0 = inlined_call_operand.hbm [shape: bf16[256,256], index: 0, kind: input, shape index: {}]   ;;  %s2297_s1 = inlined_call_operand.hbm [shape: f32[256,128], index: 1, kind: input, shape index: {}]   ;;  %s2298_s2 = inlined_call_operand.hbm [shape: f32[3,128,128], index: 2, kind: input, shape index: {}]   ;;  %s2299_s3 = inlined_call_operand.vmem [shape: f32[3,1,128], index: 3, kind: input, shape index: {}]   ;;  %s2300_s4 = inlined_call_operand.vmem [shape: f32[256,128], index: 4, kind: output, shape index: {}]  }
   0x1   :  { %2315 = sst [smem:[#allocation14_spill]] %s2296_s0 }
   0x2   :  { %2316 = sst [smem:[#allocation15_spill]] %s2297_s1 }
   0x3   :  { %2317 = sst [smem:[#allocation16_spill]] %s2300_s4 }
   0x4   :  { %9 = vsyncpa [#allocation5], 0 }
   0x5   :  { %11 = vsyncpa [#allocation5 + $0x1], 0 }
   0x6   :  { %12 = vsyncpa [#allocation7], 0  ;;  %s1843_s15 = smov 0   ;;  %s1845_s16 = smov 0  }
   0x7   :  { %s1847_s17 = smov 0   ;;  %s1849_s18 = smov 0  }
   0x8   :  { %s1851_s19 = smov 0   ;;  %s1853_s20 = smov 0  }
   0x9   :  { %s1855_s21 = smov 0   ;;  %s1857_s22 = smov 0  }
   0xa   :  { %s1859_s23 = smov 0   ;;  %s1861_s24 = smov 0  }
   0xb   :  { %s1863_s25 = smov 0  }
   0xc LB: > { %2318 = sst [smem:[#allocation12_spill]] %s1803_s23  ;;  %s27_s26 = sadd.s32 1, %s1803_s23  ;;  %s1811_s25 = sphi %s1863_s25, %s18_s25   ;;  %s1807_s24 = sphi %s1861_s24, %s2352_s24   ;;  %s1803_s23 = sphi %s1859_s23, %s2351_s23   ;;  %s1799_s22 = sphi %s1857_s22, %s2350_s22   ;;  %s1795_s21 = sphi %s1855_s21, %s2342_s21   ;;  %s1791_s20 = sphi %s1853_s20, %s2349_s20   ;;  %s1787_s19 = sphi %s1851_s19, %s2348_s19   ;;  %s1783_s18 = sphi %s1849_s18, %s2347_s18   ;;  %s1779_s17 = sphi %s1847_s17, %s2346_s17   ;;  %s1775_s16 = sphi %s1845_s16, %s2345_s16   ;;  %s1771_s15 = sphi %s1843_s15, %s2344_s15  }
   0xd   : > { %s30_s27 = sadd.s32 1, %s1807_s24  ;;  %p28_p0 = scmp.ge.s32.totalorder %s27_s26, 2 }
   0xe   : > { %p34_p1 = scmp.eq.s32.totalorder %s1807_s24, 2  ;;  %s41_s28 = sadd.s32 1, %s1791_s20 }
   0xf   : > { %p48_p2 = scmp.ne.s32.totalorder %s1791_s20, %s1787_s19  ;;  %s2354_s26 = smov (%p28_p0, %s27_s26), 0 }
  0x10   : > { %s2356_s27 = smov (!%p28_p0, %s30_s27), %s1807_s24  ;;  %p2304_p4 = scmp.eq.s32.totalorder %s1811_s25, 0 }
  0x11   : > { %s35_s29 = scalar_select %p34_p1, 0, %s1803_s23 }
  0x12   : > { %p32_p3 = scmp.ge.s32.totalorder %s2356_s27, 3  ;;  %p1913_p5 = por %p2304_p4, %p48_p2 }
  0x13   : > { %p2303_p8 = scmp.lt.s32.totalorder %s1811_s25, 6  ;;  %s194_s8 = sand.u32 1, %s1811_s25  }
  0x14   : > { %s2358_s27 = smov (%p32_p3, %s2356_s27), 0  ;;  %s196_s9 = sand.u32 1, %s1791_s20  }
  0x15   : > { %2319 = sst [smem:[#allocation13_spill]] %s2358_s27  ;;  %p36_p6 = scmp.eq.s32.totalorder %s2358_s27, 2 }
  0x16   : > { %s85_s5 = ssub.s32 %s1807_s24, %s2358_s27  ;;  %s1217_s11 = sshll.u32 %s196_s9, 7 }
  0x17   : > { %p1920_p7 = scmp.eq.s32.totalorder %s85_s5, 0  ;;  %s1254_s12 = sshll.u32 %s35_s29, 11 }
  0x18   : > { %s37_s7 = scalar_select %p36_p6, 0, %s2354_s26 }
  0x19   : > { %s2322_s0 = sld [smem:[#allocation14_spill]]  ;;  %s198_s5 = scalar_lea.vmem [#allocation4], %s1217_s11 }
  0x1a   : > { %s38_s10 = ssub.s32 %s35_s29, %s37_s7  ;;  %s208_s27 = sshll.u32 %s198_s5, 4  ;;  %s1936_s27 = int_to_ptr.vmem [resolvable:$true] %s208_s27 }
  0x1b   : > { %p39_p9 = scmp.eq.s32.totalorder %s38_s10, 0  ;;  %p1942_p10 = pnand %p2303_p8, %p1913_p5 }
  0x1d   : > { %s1929_s13 = scalar_select %p39_p9, %s1791_s20, %s41_s28  }
  0x1e   : > { %s1946_s28 = scalar_lea.sflag [#allocation5], %s194_s8  ;;  %p1627_p12 = pneg %p1942_p10 }
  0x1f   : > { %s1934_s4 = scalar_lea.hbm %s2322_s0, %s1254_s12  ;;  %s1630_s30 = scalar_lea.hbm %s2322_s0, 4096 }
  0x20   : > { %s1625_s23 = scalar_lea.hbm %s1934_s4, 2048  ;;  %p1631_p1 = scmp.lt.u32.totalorder %s1934_s4, %s2322_s0 }
  0x21   : > { %p1626_p11 = scmp.ne.s32.totalorder %s1934_s4, %s1625_s23  ;;  %p1632_p2 = scmp.lt.u32.totalorder %s1630_s30, %s1625_s23 }
  0x22   : > { %p1634_p5 = scmp.lt.u32.totalorder %s1625_s23, %s1934_s4 }
  0x23   : > { %p1628_p13 = pnand %p1627_p12, %p1626_p11  ;;  %p1633_p3 = por %p1632_p2, %p1631_p1 }
  0x25   : > { %p1629_p0 = pneg %p1628_p13  ;;  %p1635_p6 = por %p1634_p5, %p1633_p3 }
  0x27   : > { %p1636_p9 = pnand %p1635_p6, %p1629_p0 }
  0x29   : > { %1639 = shalt.err (!%p1636_p9)
}
  0x2a   : > { %s1640_s8 = scalar_lea.vmem %s1936_s27, 2048  ;;  %s1813_s12 = smov [#allocation4]  }
  0x2b   : > { %p1641_p11 = scmp.ne.s32.totalorder %s1936_s27, %s1640_s8  ;;  %s1645_s14 = sshll.u32 %s1813_s12, 4  ;;  %s1646_s14 = int_to_ptr.vmem [resolvable:$false] %s1645_s14 }
  0x2c   : > { %s1647_s5 = scalar_lea.vmem %s1646_s14, 4096  ;;  %p1648_p4 = scmp.lt.s32.totalorder %s1936_s27, %s1646_s14 }
  0x2d   : > { %p1643_p13 = pnand %p1641_p11, %p1627_p12  ;;  %p1649_p1 = scmp.lt.s32.totalorder %s1647_s5, %s1640_s8 }
  0x2f   : > { %p1644_p8 = pneg %p1643_p13  ;;  %p1650_p2 = por %p1649_p1, %p1648_p4 }
  0x31   : > { %p1651_p3 = pnand %p1650_p2, %p1644_p8 }
  0x33   : > { %1654 = shalt.err (!%p1651_p3)
}
  0x34   : > { %s2306_s23 = smov 128   ;;  %s2308_s29 = smov 8  }
  0x35   : > { %1503 = dma.hbm_to_vmem [thread:$0]  (!%p1942_p10), %s1934_s4, 2048, %s1936_s27, %s1946_s28, %s2306_s23, %s2306_s23, %s2308_s29  }
  0x36   : > { %s2305_s9 = sadd.s32 4294967295, %s1811_s25   ;;  %p54_p4 = scmp.ne.s32.totalorder %s1787_s19, %s1783_s18 }
  0x37   : > { %p1982_p8 = scmp.eq.s32.totalorder %s2305_s9, 0  ;;  %p101_p12 = scmp.ne.s32.totalorder %s1775_s16, %s1771_s15 }
  0x38   : > { %p1214_p0 = scmp.ge.s32.totalorder %s1811_s25, 1  ;;  %p168_p10 = scmp.lt.s32.totalorder %s1811_s25, 7 }
  0x39   : > { %s2324_s30 = scalar_select %p1982_p8, 1, 0 }
  0x3a   : > { %p1991_p5 = por %p1982_p8, %p54_p4  ;;  %p1998_p6 = por %p101_p12, %p1982_p8 }
  0x3b   : > { %p2002_p9 = pnand %p1214_p0, %p168_p10  ;;  %s1816_s7 = smov [#allocation6]  }
  0x3c   : > { %s2325_s4 = scalar_select %p1991_p5, 1, 0 }
  0x3d   : > { %s2326_s18 = scalar_select %p1998_p6, 1, 0 }
  0x3e   : > { %s2327_s27 = scalar_select %p2002_p9, 1, 0 }
  0x3f   : > { %s180_s10 = sshll.u32 %s1816_s7, 4  ;;  %p1496_p11 = pneg %p2002_p9  ;;  %s181_s10 = int_to_ptr.vmem [resolvable:$true] %s180_s10 }
  0x40   : > { %s1255_s15 = sshll.u32 %s1807_s24, 11  ;;  %s88_s8 = sadd.s32 1, %s1779_s17 }
  0x41   : > { %p2011_p13 = pnand %p1496_p11, %p1982_p8  ;;  %s2329_s1 = sld [smem:[#allocation15_spill]] }
  0x42   : > { %s2019_s12 = scalar_select %p1920_p7, %s1779_s17, %s88_s8  }
  0x43   : > { %p1657_p3 = pneg %p2011_p13 }
  0x47   : > { %s1655_s9 = scalar_lea.hbm %s2329_s1, 4096 }
  0x48   : > { %p1656_p2 = scmp.ne.s32.totalorder %s2329_s1, %s1655_s9  ;;  %p1662_p0 = scmp.lt.u32.totalorder %s1655_s9, %s2329_s1 }
  0x4a   : > { %p1658_p4 = pnand %p1657_p3, %p1656_p2 }
  0x4c   : > { %p1659_p12 = pneg %p1658_p4 }
  0x4e   : > { %p1664_p10 = pnand %p1662_p0, %p1659_p12 }
  0x50   : > { %1667 = shalt.err (!%p1664_p10)
}
  0x51   : > { %s1668_s6 = scalar_lea.vmem %s181_s10, 4096  ;;  %p1676_p6 = scmp.lt.s32.totalorder %s181_s10, %s181_s10 }
  0x52   : > { %p1669_p7 = scmp.ne.s32.totalorder %s181_s10, %s1668_s6  ;;  %p1677_p8 = scmp.lt.s32.totalorder %s1668_s6, %s1668_s6 }
  0x54   : > { %p1671_p11 = pnand %p1669_p7, %p1657_p3  ;;  %p1678_p5 = por %p1677_p8, %p1676_p6 }
  0x56   : > { %p1672_p1 = pneg %p1671_p11 }
  0x58   : > { %p1679_p9 = pnand %p1678_p5, %p1672_p1 }
  0x5a   : > { %1682 = shalt.err (!%p1679_p9)
}
  0x5b   : > { %s2330_s23 = smov 8   ;;  %s2331_s8 = smov 128  }
  0x5c   : > { %1499 = dma.hbm_to_vmem [thread:$0]  (!%p2011_p13), %s2329_s1, 4096, %s181_s10, [#allocation7], %s2331_s8, %s2331_s8, %s2330_s23  }
  0x5d   : > { %p2332_p2 = scmp.eq.s32.totalorder %s1811_s25, 0  ;;  %p2333_p3 = scmp.ne.s32.totalorder %s1779_s17, %s1775_s16 }
  0x5e   : > { %s220_s0 = sand.u32 1, %s1779_s17   ;;  %s2051_s11 = scalar_lea.hbm %s2298_s2, %s1255_s15 }
  0x5f   : > { %p97_p4 = por %p2333_p3, %p2332_p2  ;;  %s1221_s29 = sshll.u32 %s220_s0, 7 }
  0x60   : > { %p2334_p8 = scmp.lt.s32.totalorder %s1811_s25, 6  ;;  %s222_s10 = scalar_lea.vmem [#allocation8], %s1221_s29 }
  0x61   : > { %s229_s14 = sshll.u32 %s222_s10, 4  ;;  %s1683_s5 = scalar_lea.hbm %s2051_s11, 2048  ;;  %s2059_s14 = int_to_ptr.vmem [resolvable:$true] %s229_s14 }
  0x62   : > { %p2055_p5 = pnand %p2334_p8, %p97_p4  ;;  %p1684_p6 = scmp.ne.s32.totalorder %s2051_s11, %s1683_s5 }
  0x63   : > { %s1688_s9 = scalar_lea.hbm %s2298_s2, 6144  ;;  %p1689_p12 = scmp.lt.u32.totalorder %s2051_s11, %s2298_s2 }
  0x64   : > { %p1685_p9 = pneg %p2055_p5  ;;  %p1690_p0 = scmp.lt.u32.totalorder %s1688_s9, %s1683_s5 }
  0x65   : > { %p1692_p7 = scmp.lt.u32.totalorder %s1683_s5, %s2051_s11 }
  0x66   : > { %p1686_p13 = pnand %p1685_p9, %p1684_p6  ;;  %p1691_p10 = por %p1690_p0, %p1689_p12 }
  0x68   : > { %p1687_p1 = pneg %p1686_p13  ;;  %p1693_p11 = por %p1692_p7, %p1691_p10 }
  0x6a   : > { %p1694_p2 = pnand %p1693_p11, %p1687_p1 }
  0x6c   : > { %1697 = shalt.err (!%p1694_p2)
}
  0x6d   : > { %s1698_s29 = scalar_lea.vmem %s2059_s14, 2048  ;;  %s1817_s10 = smov [#allocation8]  }
  0x6e   : > { %p1699_p3 = scmp.ne.s32.totalorder %s2059_s14, %s1698_s29  ;;  %s1703_s15 = sshll.u32 %s1817_s10, 4  ;;  %s1704_s15 = int_to_ptr.vmem [resolvable:$false] %s1703_s15 }
  0x6f   : > { %s1705_s1 = scalar_lea.vmem %s1704_s15, 4096  ;;  %p1706_p6 = scmp.lt.s32.totalorder %s2059_s14, %s1704_s15 }
  0x70   : > { %p1701_p4 = pnand %p1699_p3, %p1685_p9  ;;  %p1707_p13 = scmp.lt.s32.totalorder %s1705_s1, %s1698_s29 }
  0x72   : > { %p1702_p8 = pneg %p1701_p4  ;;  %p1708_p12 = por %p1707_p13, %p1706_p6 }
  0x74   : > { %p1709_p0 = pnand %p1708_p12, %p1702_p8 }
  0x76   : > { %1712 = shalt.err (!%p1709_p0)
}
  0x77   : > { %1506 = dma.hbm_to_vmem [thread:$0]  (!%p2055_p5), %s2051_s11, 2048, %s2059_s14, %s1946_s28, %s2331_s8, %s2331_s8, %s2330_s23  }
  0x78   : > { %p2336_p9 = scmp.ne.s32.totalorder %s2327_s27, 0 }
  0x79   : > { %s2337_s5 = sadd.s32 (!%p2336_p9), 4294967295, %s1811_s25   ;;  %s251_s9 = sand.u32 (!%p2336_p9), 1, %s1787_s19  }
  0x7a   : > { %247 = sbr.rel (%p2336_p9) target bundleno = 982 (0x3d6), region = 36  ;;  %s249_s0 = sand.u32 (!%p2336_p9), 1, %s2337_s5  }
  0x7b   : > { %s1225_s7 = sshll.u32 (!%p2336_p9), %s251_s9, 7  ;;  %s250_s29 = scalar_lea.sflag (!%p2336_p9), [#allocation5], %s249_s0 }
  0x7c   : > { %s2095_s10 = scalar_lea.vmem (!%p2336_p9), [#allocation4], %s1225_s7  ;;  %p2338_p1 = scmp.ne.s32.totalorder (!%p2336_p9), %s2325_s4, 0 }
  0x81   : > { %1758 = dma.done.wait (%p2338_p1), %s250_s29, 2048  }
  0x82   : > { %1760 = vsyncadd (%p2338_p1), %s250_s29, 4294965248  ;;  %p2339_p5 = scmp.ne.s32.totalorder %s2324_s30, 0 }
  0x84   : > { %1762 = dma.done.wait (%p2339_p5), [#allocation7], 4096  }
  0x85   : > { %1764 = vsyncadd (%p2339_p5), [#allocation7], 4294963200  ;;  %s264_s28 = sand.u32 1, %s1775_s16   ;;  %p2340_p10 = scmp.ne.s32.totalorder %s2326_s18, 0 }
  0x86   : > { %s1227_s27 = sshll.u32 %s264_s28, 7 }
  0x87   : > { %s2106_s23 = scalar_lea.vmem [#allocation8], %s1227_s27 }
  0x88   : > { %1766 = dma.done.wait (%p2340_p10), %s250_s29, 2048  }
  0x89   : > { %1768 = vsyncadd (%p2340_p10), %s250_s29, 4294965248  ;;  %p304_p7 = scmp.lt.s32.totalorder %s1799_s22, 2  ;;  %p307_p11 = scmp.eq.s32.totalorder %s1799_s22, 2 }
  0x8a   : > { %s1230_s30 = sshll.u32 %s1795_s21, 7  ;;  %p319_p2 = scmp.eq.s32.totalorder %s1799_s22, 0 }
  0x8b   : > { %s305_s4 = scalar_select %p304_p7, %s1799_s22, 2 }
  0x8c   : > { %s308_s8 = scalar_select %p307_p11, %s1795_s21, 0 }
  0x8d   : > { %s2123_s18 = scalar_lea.vmem %s2299_s3, %s305_s4  ;;  %p320_p3 = scmp.eq.s32.totalorder %s1795_s21, 0 }
  0x8e   : > { %s1228_s14 = sshll.u32 %s308_s8, 4  ;;  %s2341_s0 = sld [smem:[#allocation16_spill]] }
  0x8f   : > { %p310_p4 = scmp.lt.s32.totalorder %s1228_s14, 31  ;;  %p321_p8 = pnand %p320_p3, %p319_p2 }
  0x90   : > { %v325_v0 = vld [vmem:[#allocation6] sm:$0xff] (!%p321_p8)  ;;  %v326_v1 = vld [vmem:[#allocation6 + $0x8] sm:$0xff] (!%p321_p8)  ;;  %v327_v2 = vld [vmem:[#allocation6 + $0x10] sm:$0xff] (!%p321_p8) }
  0x91   : > { %s2360_s14 = smov (!%p310_p4, %s1228_s14), 31  ;;  %324 = sbr.rel (%p321_p8) target bundleno = 162 (0xa2), region = 52 }
  0x92   : > { %s1229_s15 = sshll.u32 %s2360_s14, 3  ;;  %357 = vst [vmem:[#allocation2] sm:$0xff] (!%p321_p8), %v325_v0  ;;  %358 = vst [vmem:[#allocation2 + $0x8] sm:$0xff] (!%p321_p8), %v326_v1  ;;  %v328_v3 = vld [vmem:[#allocation6 + $0x18] sm:$0xff] (!%p321_p8)  ;;  %v329_v4 = vld [vmem:[#allocation6 + $0x20] sm:$0xff] (!%p321_p8) }
  0x93   : > { %359 = vst [vmem:[#allocation2 + $0x10] sm:$0xff] (!%p321_p8), %v327_v2  ;;  %v330_v5 = vld [vmem:[#allocation6 + $0x28] sm:$0xff] (!%p321_p8)  ;;  %360 = vst [vmem:[#allocation2 + $0x18] sm:$0xff] (!%p321_p8), %v328_v3  ;;  %v331_v6 = vld [vmem:[#allocation6 + $0x30] sm:$0xff] (!%p321_p8) }
  0x94   : > { %s2131_s9 = scalar_lea.vmem %s2341_s0, %s1229_s15  ;;  %361 = vst [vmem:[#allocation2 + $0x20] sm:$0xff] (!%p321_p8), %v329_v4  ;;  %362 = vst [vmem:[#allocation2 + $0x28] sm:$0xff] (!%p321_p8), %v330_v5  ;;  %v332_v7 = vld [vmem:[#allocation6 + $0x38] sm:$0xff] (!%p321_p8)  ;;  %v333_v8 = vld [vmem:[#allocation6 + $0x40] sm:$0xff] (!%p321_p8) }
  0x95   : > { %363 = vst [vmem:[#allocation2 + $0x30] sm:$0xff] (!%p321_p8), %v331_v6  ;;  %364 = vst [vmem:[#allocation2 + $0x38] sm:$0xff] (!%p321_p8), %v332_v7  ;;  %v334_v9 = vld [vmem:[#allocation6 + $0x48] sm:$0xff] (!%p321_p8)  ;;  %v335_v10 = vld [vmem:[#allocation6 + $0x50] sm:$0xff] (!%p321_p8) }
  0x96   : > { %365 = vst [vmem:[#allocation2 + $0x40] sm:$0xff] (!%p321_p8), %v333_v8  ;;  %v336_v11 = vld [vmem:[#allocation6 + $0x58] sm:$0xff] (!%p321_p8)  ;;  %366 = vst [vmem:[#allocation2 + $0x48] sm:$0xff] (!%p321_p8), %v334_v9  ;;  %v337_v12 = vld [vmem:[#allocation6 + $0x60] sm:$0xff] (!%p321_p8) }
  0x97   : > { %367 = vst [vmem:[#allocation2 + $0x50] sm:$0xff] (!%p321_p8), %v335_v10  ;;  %368 = vst [vmem:[#allocation2 + $0x58] sm:$0xff] (!%p321_p8), %v336_v11  ;;  %v338_v13 = vld [vmem:[#allocation6 + $0x68] sm:$0xff] (!%p321_p8)  ;;  %v339_v14 = vld [vmem:[#allocation6 + $0x70] sm:$0xff] (!%p321_p8) }
  0x98   : > { %369 = vst [vmem:[#allocation2 + $0x60] sm:$0xff] %v337_v12  ;;  %370 = vst [vmem:[#allocation2 + $0x68] sm:$0xff] %v338_v13  ;;  %v340_v15 = vld [vmem:[#allocation6 + $0x78] sm:$0xff]  ;;  %v341_v16 = vld [vmem:[#allocation6 + $0x80] sm:$0xff] }
  0x99   : > { %371 = vst [vmem:[#allocation2 + $0x70] sm:$0xff] %v339_v14  ;;  %v342_v17 = vld [vmem:[#allocation6 + $0x88] sm:$0xff]  ;;  %372 = vst [vmem:[#allocation2 + $0x78] sm:$0xff] %v340_v15  ;;  %v343_v18 = vld [vmem:[#allocation6 + $0x90] sm:$0xff] }
  0x9a   : > { %373 = vst [vmem:[#allocation2 + $0x80] sm:$0xff] %v341_v16  ;;  %374 = vst [vmem:[#allocation2 + $0x88] sm:$0xff] %v342_v17  ;;  %v344_v19 = vld [vmem:[#allocation6 + $0x98] sm:$0xff]  ;;  %v345_v20 = vld [vmem:[#allocation6 + $0xa0] sm:$0xff] }
  0x9b   : > { %375 = vst [vmem:[#allocation2 + $0x90] sm:$0xff] %v343_v18  ;;  %376 = vst [vmem:[#allocation2 + $0x98] sm:$0xff] %v344_v19  ;;  %v346_v21 = vld [vmem:[#allocation6 + $0xa8] sm:$0xff]  ;;  %v347_v22 = vld [vmem:[#allocation6 + $0xb0] sm:$0xff] }
  0x9c   : > { %377 = vst [vmem:[#allocation2 + $0xa0] sm:$0xff] %v345_v20  ;;  %v348_v23 = vld [vmem:[#allocation6 + $0xb8] sm:$0xff]  ;;  %378 = vst [vmem:[#allocation2 + $0xa8] sm:$0xff] %v346_v21  ;;  %v349_v24 = vld [vmem:[#allocation6 + $0xc0] sm:$0xff] }
  0x9d   : > { %379 = vst [vmem:[#allocation2 + $0xb0] sm:$0xff] %v347_v22  ;;  %380 = vst [vmem:[#allocation2 + $0xb8] sm:$0xff] %v348_v23  ;;  %v350_v25 = vld [vmem:[#allocation6 + $0xc8] sm:$0xff]  ;;  %v351_v26 = vld [vmem:[#allocation6 + $0xd0] sm:$0xff] }
  0x9e   : > { %381 = vst [vmem:[#allocation2 + $0xc0] sm:$0xff] %v349_v24  ;;  %382 = vst [vmem:[#allocation2 + $0xc8] sm:$0xff] %v350_v25  ;;  %v352_v27 = vld [vmem:[#allocation6 + $0xd8] sm:$0xff]  ;;  %v353_v28 = vld [vmem:[#allocation6 + $0xe0] sm:$0xff] }
  0x9f   : > { %383 = vst [vmem:[#allocation2 + $0xd0] sm:$0xff] %v351_v26  ;;  %v354_v29 = vld [vmem:[#allocation6 + $0xe8] sm:$0xff]  ;;  %384 = vst [vmem:[#allocation2 + $0xd8] sm:$0xff] %v352_v27  ;;  %v355_v30 = vld [vmem:[#allocation6 + $0xf0] sm:$0xff] }
  0xa0   : > { %385 = vst [vmem:[#allocation2 + $0xe0] sm:$0xff] %v353_v28  ;;  %386 = vst [vmem:[#allocation2 + $0xe8] sm:$0xff] %v354_v29  ;;  %v356_v31 = vld [vmem:[#allocation6 + $0xf8] sm:$0xff] }
  0xa1   : > { %387 = vst [vmem:[#allocation2 + $0xf0] sm:$0xff] %v355_v30  ;;  %388 = vst [vmem:[#allocation2 + $0xf8] sm:$0xff] %v356_v31 }
  0xa2 PF: > { %p390_p6 = pnand %p320_p3, %p304_p7 }
  0xa3   : > { %v442_v32 = vld [vmem:[%s2106_s23] sm:$0xff] (!%p390_p6)  ;;  %v443_v33 = vld [vmem:[%s2106_s23 + $0x8] sm:$0xff] (!%p390_p6)  ;;  %v444_v34 = vld [vmem:[%s2106_s23 + $0x10] sm:$0xff] (!%p390_p6) }
  0xa4   : > { %393 = sbr.rel (%p390_p6) target bundleno = 440 (0x1b8), region = 56  ;;  %v458_v35 = vpack.c.bf16 (!%p390_p6), %v443_v33, %v442_v32  ;;  %v445_v36 = vld [vmem:[%s2106_s23 + $0x18] sm:$0xff] (!%p390_p6)  ;;  %v446_v38 = vld [vmem:[%s2106_s23 + $0x20] sm:$0xff] (!%p390_p6)  ;;  %v447_v39 = vld [vmem:[%s2106_s23 + $0x28] sm:$0xff] (!%p390_p6) }
  0xa5   : > { %v459_v37 = vpack.c.bf16 (!%p390_p6), %v445_v36, %v444_v34  ;;  %v460_v40 = vpack.c.bf16 (!%p390_p6), %v447_v39, %v446_v38  ;;  %v448_v41 = vld [vmem:[%s2106_s23 + $0x30] sm:$0xff] (!%p390_p6)  ;;  %v394_v42 = vld [vmem:[#allocation2] sm:$0xff] (!%p390_p6)  ;;  %v395_v43 = vld [vmem:[#allocation2 + $0x8] sm:$0xff] (!%p390_p6) }
  0xa6   : > { %1360 = vmatprep.subr.bf16.mxu0 (!%p390_p6), %v458_v35  ;;  %1440 = vmatprep.subr.bf16.mxu1 (!%p390_p6), %v458_v35  ;;  %v449_v44 = vld [vmem:[%s2106_s23 + $0x38] sm:$0xff] (!%p390_p6)  ;;  %v426_v45 = vpack.c.bf16 (!%p390_p6), %v395_v43, %v394_v42  ;;  %v410_v46 = vld [vmem:[#allocation2 + $0x80] sm:$0xff] (!%p390_p6)  ;;  %v411_v47 = vld [vmem:[#allocation2 + $0x88] sm:$0xff] (!%p390_p6) }
  0xa7   : > { %1361 = vmatpush3.bf16.msra.mxu0 (!%p390_p6), %v458_v35  ;;  %1448 = vmatpush3.bf16.msra.mxu1 (!%p390_p6), %v458_v35  ;;  %v434_v48 = vpack.c.bf16 (!%p390_p6), %v411_v47, %v410_v46  ;;  %v461_v49 = vpack.c.bf16 (!%p390_p6), %v449_v44, %v448_v41  ;;  %v450_v50 = vld [vmem:[%s2106_s23 + $0x40] sm:$0xff] (!%p390_p6)  ;;  %v451_v51 = vld [vmem:[%s2106_s23 + $0x48] sm:$0xff] (!%p390_p6)  ;;  %v452_v53 = vld [vmem:[%s2106_s23 + $0x50] sm:$0xff] (!%p390_p6) }
  0xa8   : > { %1362 = vmatprep.subr.bf16.mxu0 (!%p390_p6), %v459_v37  ;;  %1441 = vmatprep.subr.bf16.mxu1 (!%p390_p6), %v459_v37  ;;  %v462_v52 = vpack.c.bf16 (!%p390_p6), %v451_v51, %v450_v50  ;;  %v453_v54 = vld [vmem:[%s2106_s23 + $0x58] sm:$0xff] (!%p390_p6)  ;;  %v454_v56 = vld [vmem:[%s2106_s23 + $0x60] sm:$0xff] (!%p390_p6)  ;;  %v455_v57 = vld [vmem:[%s2106_s23 + $0x68] sm:$0xff] (!%p390_p6) }
  0xa9   : > { %1376 = vmatprep.mubr.bf16.mxu0 (!%p390_p6), %v426_v45  ;;  %1392 = vmatprep.mubr.bf16.mxu1 (!%p390_p6), %v434_v48  ;;  %v463_v55 = vpack.c.bf16 (!%p390_p6), %v453_v54, %v452_v53  ;;  %v464_v58 = vpack.c.bf16 (!%p390_p6), %v455_v57, %v454_v56  ;;  %v456_v59 = vld [vmem:[%s2106_s23 + $0x70] sm:$0xff] (!%p390_p6)  ;;  %v457_v60 = vld [vmem:[%s2106_s23 + $0x78] sm:$0xff] (!%p390_p6)  ;;  %v398_v2 = vld [vmem:[#allocation2 + $0x20] sm:$0xff] (!%p390_p6) }
  0xaa   : > { %v465_v61 = vpack.c.bf16 (!%p390_p6), %v457_v60, %v456_v59  ;;  %v396_v62 = vld [vmem:[#allocation2 + $0x10] sm:$0xff] (!%p390_p6)  ;;  %v397_v63 = vld [vmem:[#allocation2 + $0x18] sm:$0xff] (!%p390_p6)  ;;  %v399_v3 = vld [vmem:[#allocation2 + $0x28] sm:$0xff] (!%p390_p6) }
  0xab   : > { %1363 = vmatpush3.bf16.msra.mxu0 %v459_v37  ;;  %1449 = vmatpush3.bf16.msra.mxu1 %v459_v37  ;;  %v412_v0 = vld [vmem:[#allocation2 + $0x90] sm:$0xff]  ;;  %v413_v1 = vld [vmem:[#allocation2 + $0x98] sm:$0xff]  ;;  %v414_v4 = vld [vmem:[#allocation2 + $0xa0] sm:$0xff]  ;;  %v427_v6 = vpack.c.bf16 %v397_v63, %v396_v62  ;;  %v428_v8 = vpack.c.bf16 %v399_v3, %v398_v2 }
  0xac   : > { %1364 = vmatprep.subr.bf16.mxu0 %v460_v40  ;;  %1442 = vmatprep.subr.bf16.mxu1 %v460_v40  ;;  %v415_v5 = vld [vmem:[#allocation2 + $0xa8] sm:$0xff]  ;;  %v435_v7 = vpack.c.bf16 %v413_v1, %v412_v0  ;;  %v400_v10 = vld [vmem:[#allocation2 + $0x30] sm:$0xff]  ;;  %v401_v11 = vld [vmem:[#allocation2 + $0x38] sm:$0xff] }
  0xad   : > { %v436_v9 = vpack.c.bf16 %v415_v5, %v414_v4  ;;  %v416_v12 = vld [vmem:[#allocation2 + $0xb0] sm:$0xff]  ;;  %v417_v13 = vld [vmem:[#allocation2 + $0xb8] sm:$0xff]  ;;  %v402_v14 = vld [vmem:[#allocation2 + $0x40] sm:$0xff]  ;;  %v429_v18 = vpack.c.bf16 %v401_v11, %v400_v10 }
  0xae   : > { %v403_v15 = vld [vmem:[#allocation2 + $0x48] sm:$0xff]  ;;  %v418_v16 = vld [vmem:[#allocation2 + $0xc0] sm:$0xff]  ;;  %v437_v19 = vpack.c.bf16 %v417_v13, %v416_v12  ;;  %v404_v22 = vld [vmem:[#allocation2 + $0x50] sm:$0xff] }
  0xaf   : > { %1365 = vmatpush3.bf16.msra.mxu0 %v460_v40  ;;  %1450 = vmatpush3.bf16.msra.mxu1 %v460_v40  ;;  %v419_v17 = vld [vmem:[#allocation2 + $0xc8] sm:$0xff]  ;;  %v430_v20 = vpack.c.bf16 %v403_v15, %v402_v14  ;;  %v405_v23 = vld [vmem:[#allocation2 + $0x58] sm:$0xff]  ;;  %v420_v24 = vld [vmem:[#allocation2 + $0xd0] sm:$0xff] }
  0xb0   : > { %1366 = vmatprep.subr.bf16.mxu0 %v461_v49  ;;  %1443 = vmatprep.subr.bf16.mxu1 %v461_v49  ;;  %v438_v21 = vpack.c.bf16 %v419_v17, %v418_v16  ;;  %v421_v25 = vld [vmem:[#allocation2 + $0xd8] sm:$0xff]  ;;  %v406_v26 = vld [vmem:[#allocation2 + $0x60] sm:$0xff]  ;;  %v407_v27 = vld [vmem:[#allocation2 + $0x68] sm:$0xff]  ;;  %v431_v30 = vpack.c.bf16 %v405_v23, %v404_v22 }
  0xb1   : > { %v422_v28 = vld [vmem:[#allocation2 + $0xe0] sm:$0xff]  ;;  %v423_v29 = vld [vmem:[#allocation2 + $0xe8] sm:$0xff]  ;;  %v439_v31 = vpack.c.bf16 %v421_v25, %v420_v24  ;;  %v432_v32 = vpack.c.bf16 %v407_v27, %v406_v26  ;;  %v408_v34 = vld [vmem:[#allocation2 + $0x70] sm:$0xff] }
  0xb2   : > { %v440_v33 = vpack.c.bf16 %v423_v29, %v422_v28  ;;  %v409_v35 = vld [vmem:[#allocation2 + $0x78] sm:$0xff]  ;;  %v424_v36 = vld [vmem:[#allocation2 + $0xf0] sm:$0xff] }
  0xb3   : > { %1367 = vmatpush3.bf16.msra.mxu0 %v461_v49  ;;  %1451 = vmatpush3.bf16.msra.mxu1 %v461_v49  ;;  %v425_v37 = vld [vmem:[#allocation2 + $0xf8] sm:$0xff]  ;;  %v433_v38 = vpack.c.bf16 %v409_v35, %v408_v34 }
  0xb4   : > { %1368 = vmatprep.subr.bf16.mxu0 %v462_v52  ;;  %1444 = vmatprep.subr.bf16.mxu1 %v462_v52  ;;  %v441_v39 = vpack.c.bf16 %v425_v37, %v424_v36 }
  0xb7   : > { %1369 = vmatpush3.bf16.msra.mxu0 %v462_v52  ;;  %1452 = vmatpush3.bf16.msra.mxu1 %v462_v52 }
  0xb8   : > { %1370 = vmatprep.subr.bf16.mxu0 %v463_v55  ;;  %1445 = vmatprep.subr.bf16.mxu1 %v463_v55 }
  0xbb   : > { %1371 = vmatpush3.bf16.msra.mxu0 %v463_v55  ;;  %1453 = vmatpush3.bf16.msra.mxu1 %v463_v55 }
  0xbc   : > { %1372 = vmatprep.subr.bf16.mxu0 %v464_v58  ;;  %1446 = vmatprep.subr.bf16.mxu1 %v464_v58 }
  0xbf   : > { %1373 = vmatpush3.bf16.msra.mxu0 %v464_v58  ;;  %1454 = vmatpush3.bf16.msra.mxu1 %v464_v58 }
  0xc0   : > { %1374 = vmatprep.subr.bf16.mxu0 %v465_v61  ;;  %1447 = vmatprep.subr.bf16.mxu1 %v465_v61 }
  0xc3   : > { %1375 = vmatpush3.bf16.msra.mxu0 %v465_v61  ;;  %1455 = vmatpush3.bf16.msra.mxu1 %v465_v61 }
  0xc6   : > { %1377 = vmatmul.mubr.bf16.vlgmr.msra.gmra.mrb[0].mxu0 %v427_v6  ;;  %1393 = vmatmul.mubr.bf16.vlgmr.msra.gmra.mrb[0].mxu1 %v435_v7 }
  0xc7   : > { %1380 = vmatprep.mubr.bf16.mxu0 %v428_v8  ;;  %1396 = vmatprep.mubr.bf16.mxu1 %v436_v9 }
  0xce   : > { %1381 = vmatmul.mubr.bf16.gmra.mrb[4].mxu0 %v429_v18  ;;  %1397 = vmatmul.mubr.bf16.gmra.mrb[4].mxu1 %v437_v19 }
  0xcf   : > { %1384 = vmatprep.mubr.bf16.mxu0 %v430_v20  ;;  %1400 = vmatprep.mubr.bf16.mxu1 %v438_v21 }
  0xd6   : > { %1385 = vmatmul.mubr.bf16.gmra.mrb[8].mxu0 %v431_v30  ;;  %1401 = vmatmul.mubr.bf16.gmra.mrb[8].mxu1 %v439_v31 }
  0xd7   : > { %1388 = vmatprep.mubr.bf16.mxu0 %v432_v32  ;;  %1404 = vmatprep.mubr.bf16.mxu1 %v440_v33 }
  0xde   : > { %1389 = vmatmul.mubr.bf16.gmra.mrb[12].mxu0 %v433_v38  ;;  %1405 = vmatmul.mubr.bf16.gmra.mrb[12].mxu1 %v441_v39 }
 0x199   : > { %v1378_v40 = vpop.f32.mrb[0].mxu0  ;;  %v1394_v41 = vpop.f32.mrb[0].mxu1 }
 0x19a   : > { %v500_v42 = vpop.f32.mrb[1].mxu0  ;;  %v564_v43 = vpop.f32.mrb[1].mxu1 }
 0x19b   : > { %v1379_v44 = vpop.f32.mrb[2].mxu0  ;;  %v1395_v45 = vpop.f32.mrb[2].mxu1 }
 0x19c   : > { %v628_v46 = vpack.c.bf16 %v1379_v44, %v1378_v40  ;;  %v636_v47 = vpack.c.bf16 %v1395_v45, %v1394_v41  ;;  %v503_v48 = vpop.f32.mrb[3].mxu0  ;;  %v567_v49 = vpop.f32.mrb[3].mxu1 }
 0x19d   : > { %v627_v50 = vpack.c.bf16 %v503_v48, %v500_v42  ;;  %v635_v51 = vpack.c.bf16 %v567_v49, %v564_v43 }
 0x19e   : > { %644 = vst [vmem:[#allocation3 + $0x8] sm:$0xff] %v628_v46  ;;  %652 = vst [vmem:[#allocation3 + $0x48] sm:$0xff] %v636_v47 }
 0x19f   : > { %643 = vst [vmem:[#allocation3] sm:$0xff] %v627_v50  ;;  %651 = vst [vmem:[#allocation3 + $0x40] sm:$0xff] %v635_v51 }
 0x1a1   : > { %v1382_v52 = vpop.f32.mrb[4].mxu0  ;;  %v1398_v53 = vpop.f32.mrb[4].mxu1 }
 0x1a2   : > { %v516_v54 = vpop.f32.mrb[5].mxu0  ;;  %v580_v55 = vpop.f32.mrb[5].mxu1 }
 0x1a3   : > { %v1383_v56 = vpop.f32.mrb[6].mxu0  ;;  %v1399_v57 = vpop.f32.mrb[6].mxu1 }
 0x1a4   : > { %v630_v58 = vpack.c.bf16 %v1383_v56, %v1382_v52  ;;  %v638_v59 = vpack.c.bf16 %v1399_v57, %v1398_v53  ;;  %v519_v60 = vpop.f32.mrb[7].mxu0  ;;  %v583_v61 = vpop.f32.mrb[7].mxu1 }
 0x1a5   : > { %v629_v62 = vpack.c.bf16 %v519_v60, %v516_v54  ;;  %v637_v63 = vpack.c.bf16 %v583_v61, %v580_v55 }
 0x1a6   : > { %646 = vst [vmem:[#allocation3 + $0x18] sm:$0xff] %v630_v58  ;;  %654 = vst [vmem:[#allocation3 + $0x58] sm:$0xff] %v638_v59 }
 0x1a7   : > { %645 = vst [vmem:[#allocation3 + $0x10] sm:$0xff] %v629_v62  ;;  %653 = vst [vmem:[#allocation3 + $0x50] sm:$0xff] %v637_v63 }
 0x1a9   : > { %v1386_v0 = vpop.f32.mrb[8].mxu0  ;;  %v1402_v1 = vpop.f32.mrb[8].mxu1 }
 0x1aa   : > { %v532_v2 = vpop.f32.mrb[9].mxu0  ;;  %v596_v3 = vpop.f32.mrb[9].mxu1 }
 0x1ab   : > { %v1387_v4 = vpop.f32.mrb[10].mxu0  ;;  %v1403_v5 = vpop.f32.mrb[10].mxu1 }
 0x1ac   : > { %v632_v6 = vpack.c.bf16 %v1387_v4, %v1386_v0  ;;  %v640_v7 = vpack.c.bf16 %v1403_v5, %v1402_v1  ;;  %v535_v8 = vpop.f32.mrb[11].mxu0  ;;  %v599_v9 = vpop.f32.mrb[11].mxu1 }
 0x1ad   : > { %v631_v10 = vpack.c.bf16 %v535_v8, %v532_v2  ;;  %v639_v11 = vpack.c.bf16 %v599_v9, %v596_v3 }
 0x1ae   : > { %648 = vst [vmem:[#allocation3 + $0x28] sm:$0xff] %v632_v6  ;;  %656 = vst [vmem:[#allocation3 + $0x68] sm:$0xff] %v640_v7 }
 0x1af   : > { %647 = vst [vmem:[#allocation3 + $0x20] sm:$0xff] %v631_v10  ;;  %655 = vst [vmem:[#allocation3 + $0x60] sm:$0xff] %v639_v11 }
 0x1b1   : > { %v1390_v12 = vpop.f32.mrb[12].mxu0  ;;  %v1406_v13 = vpop.f32.mrb[12].mxu1 }
 0x1b2   : > { %v548_v14 = vpop.f32.mrb[13].mxu0  ;;  %v612_v15 = vpop.f32.mrb[13].mxu1 }
 0x1b3   : > { %v1391_v16 = vpop.f32.mrb[14].mxu0  ;;  %v1407_v17 = vpop.f32.mrb[14].mxu1 }
 0x1b4   : > { %v634_v18 = vpack.c.bf16 %v1391_v16, %v1390_v12  ;;  %v642_v19 = vpack.c.bf16 %v1407_v17, %v1406_v13  ;;  %v551_v20 = vpop.f32.mrb[15].mxu0  ;;  %v615_v21 = vpop.f32.mrb[15].mxu1 }
 0x1b5   : > { %v633_v22 = vpack.c.bf16 %v551_v20, %v548_v14  ;;  %v641_v23 = vpack.c.bf16 %v615_v21, %v612_v15 }
 0x1b6   : > { %650 = vst [vmem:[#allocation3 + $0x38] sm:$0xff] %v634_v18  ;;  %658 = vst [vmem:[#allocation3 + $0x78] sm:$0xff] %v642_v19 }
 0x1b7   : > { %649 = vst [vmem:[#allocation3 + $0x30] sm:$0xff] %v633_v22  ;;  %657 = vst [vmem:[#allocation3 + $0x70] sm:$0xff] %v641_v23 }
 0x1b8 PF: > { %p1231_p13 = scmp.ge.s32.totalorder %s1799_s22, 2 }
 0x1b9   : > { %v686_v24 = vld [vmem:[#allocation3 + $0x40] sm:$0xff] (!%p1231_p13)  ;;  %v687_v26 = vld [vmem:[#allocation3 + $0x48] sm:$0xff] (!%p1231_p13)  ;;  %v688_v28 = vld [vmem:[#allocation3 + $0x50] sm:$0xff] (!%p1231_p13)  ;;  %s2179_s7 = scalar_lea.vmem (!%p1231_p13), [#allocation2], %s1230_s30 }
 0x1ba   : > { %661 = sbr.rel (%p1231_p13) target bundleno = 720 (0x2d0), region = 60  ;;  %v678_v25 = vld [vmem:[#allocation3] sm:$0xff] (!%p1231_p13)  ;;  %1280 = vmatprep.subr.bf16.mxu0 (!%p1231_p13), %v686_v24  ;;  %1456 = vmatprep.subr.bf16.mxu1 (!%p1231_p13), %v686_v24  ;;  %v679_v27 = vld [vmem:[#allocation3 + $0x8] sm:$0xff] (!%p1231_p13)  ;;  %v680_v30 = vld [vmem:[#allocation3 + $0x10] sm:$0xff] (!%p1231_p13) }
 0x1bb   : > { %1281 = vmatpush3.bf16.msra.mxu0 (!%p1231_p13), %v678_v25  ;;  %1464 = vmatpush3.bf16.msra.mxu1 (!%p1231_p13), %v678_v25  ;;  %v1603_v29 = vld [vmem:[%s2095_s10 + $0x4] ss:$8 sps:$4 sm:$0xff] (!%p1231_p13)   ;;  %v689_v32 = vld [vmem:[#allocation3 + $0x58] sm:$0xff] (!%p1231_p13)  ;;  %v1601_v42 = vld [vmem:[%s2095_s10] ss:$8 sps:$4 sm:$0xff] (!%p1231_p13)  }
 0x1bc   : > { %1282 = vmatprep.subr.bf16.mxu0 (!%p1231_p13), %v687_v26  ;;  %1457 = vmatprep.subr.bf16.mxu1 (!%p1231_p13), %v687_v26  ;;  %v1606_v31 = vld [vmem:[%s2095_s10 + $0x44] ss:$8 sps:$4 sm:$0xff] (!%p1231_p13)   ;;  %v681_v33 = vld [vmem:[#allocation3 + $0x18] sm:$0xff] (!%p1231_p13)  ;;  %v1604_v43 = vld [vmem:[%s2095_s10 + $0x40] ss:$8 sps:$4 sm:$0xff] (!%p1231_p13)  }
 0x1bd   : > { %813 = vmatprep.mubr.bf16.mxu0 (!%p1231_p13), %v1603_v29  ;;  %845 = vmatprep.mubr.bf16.mxu1 (!%p1231_p13), %v1606_v31  ;;  %v690_v34 = vld [vmem:[#allocation3 + $0x60] sm:$0xff] (!%p1231_p13)  ;;  %v691_v36 = vld [vmem:[#allocation3 + $0x68] sm:$0xff] (!%p1231_p13)  ;;  %v693_v40 = vld [vmem:[#allocation3 + $0x78] sm:$0xff] (!%p1231_p13) }
 0x1be   : > { %v682_v35 = vld [vmem:[#allocation3 + $0x20] sm:$0xff] (!%p1231_p13)  ;;  %v683_v37 = vld [vmem:[#allocation3 + $0x28] sm:$0xff] (!%p1231_p13)  ;;  %v692_v38 = vld [vmem:[#allocation3 + $0x70] sm:$0xff] (!%p1231_p13) }
 0x1bf   : > { %1283 = vmatpush3.bf16.msra.mxu0 (!%p1231_p13), %v679_v27  ;;  %1465 = vmatpush3.bf16.msra.mxu1 (!%p1231_p13), %v679_v27  ;;  %v684_v39 = vld [vmem:[#allocation3 + $0x30] sm:$0xff] (!%p1231_p13)  ;;  %v685_v41 = vld [vmem:[#allocation3 + $0x38] sm:$0xff] (!%p1231_p13)  ;;  %v1613_v48 = vld [vmem:[%s2095_s10 + $0x24] ss:$8 sps:$4 sm:$0xff] (!%p1231_p13)  }
 0x1c0   : > { %1284 = vmatprep.subr.bf16.mxu0 (!%p1231_p13), %v688_v28  ;;  %1458 = vmatprep.subr.bf16.mxu1 (!%p1231_p13), %v688_v28  ;;  %v1607_v44 = vld [vmem:[%s2095_s10 + $0x14] ss:$8 sps:$4 sm:$0xff] (!%p1231_p13)   ;;  %v1611_v46 = vld [vmem:[%s2095_s10 + $0x10] ss:$8 sps:$4 sm:$0xff] (!%p1231_p13)   ;;  %v1615_v49 = vld [vmem:[%s2095_s10 + $0x64] ss:$8 sps:$4 sm:$0xff] (!%p1231_p13)  }
 0x1c1   : > { %v1609_v45 = vld [vmem:[%s2095_s10 + $0x54] ss:$8 sps:$4 sm:$0xff]   ;;  %v1612_v47 = vld [vmem:[%s2095_s10 + $0x50] ss:$8 sps:$4 sm:$0xff]   ;;  %v1617_v50 = vld [vmem:[%s2095_s10 + $0x20] ss:$8 sps:$4 sm:$0xff]  }
 0x1c2   : > { %v1618_v51 = vld [vmem:[%s2095_s10 + $0x60] ss:$8 sps:$4 sm:$0xff]   ;;  %v1619_v52 = vld [vmem:[%s2095_s10 + $0x34] ss:$8 sps:$4 sm:$0xff]   ;;  %v1623_v54 = vld [vmem:[%s2095_s10 + $0x30] ss:$8 sps:$4 sm:$0xff]  }
 0x1c3   : > { %1285 = vmatpush3.bf16.msra.mxu0 %v680_v30  ;;  %1466 = vmatpush3.bf16.msra.mxu1 %v680_v30  ;;  %v1621_v53 = vld [vmem:[%s2095_s10 + $0x74] ss:$8 sps:$4 sm:$0xff]   ;;  %v1624_v55 = vld [vmem:[%s2095_s10 + $0x70] ss:$8 sps:$4 sm:$0xff]   ;;  %v2171_v58 = vld [vmem:[%s2123_s18] ss:$0 sm:$0xff] }
 0x1c4   : > { %1286 = vmatprep.subr.bf16.mxu0 %v689_v32  ;;  %1459 = vmatprep.subr.bf16.mxu1 %v689_v32 }
 0x1c7   : > { %1287 = vmatpush3.bf16.msra.mxu0 %v681_v33  ;;  %1467 = vmatpush3.bf16.msra.mxu1 %v681_v33 }
 0x1c8   : > { %1288 = vmatprep.subr.bf16.mxu0 %v690_v34  ;;  %1460 = vmatprep.subr.bf16.mxu1 %v690_v34 }
 0x1cb   : > { %1289 = vmatpush3.bf16.msra.mxu0 %v682_v35  ;;  %1468 = vmatpush3.bf16.msra.mxu1 %v682_v35 }
 0x1cc   : > { %1290 = vmatprep.subr.bf16.mxu0 %v691_v36  ;;  %1461 = vmatprep.subr.bf16.mxu1 %v691_v36 }
 0x1cf   : > { %1291 = vmatpush3.bf16.msra.mxu0 %v683_v37  ;;  %1469 = vmatpush3.bf16.msra.mxu1 %v683_v37 }
 0x1d0   : > { %1292 = vmatprep.subr.bf16.mxu0 %v692_v38  ;;  %1462 = vmatprep.subr.bf16.mxu1 %v692_v38 }
 0x1d3   : > { %1293 = vmatpush3.bf16.msra.mxu0 %v684_v39  ;;  %1470 = vmatpush3.bf16.msra.mxu1 %v684_v39 }
 0x1d4   : > { %1294 = vmatprep.subr.bf16.mxu0 %v693_v40  ;;  %1463 = vmatprep.subr.bf16.mxu1 %v693_v40 }
 0x1d7   : > { %1295 = vmatpush3.bf16.msra.mxu0 %v685_v41  ;;  %1471 = vmatpush3.bf16.msra.mxu1 %v685_v41 }
 0x1da   : > { %814 = vmatmul.mubr.bf16.vlgmr.msra.gmra.mrb[0].mxu0 %v1601_v42  ;;  %846 = vmatmul.mubr.bf16.vlgmr.msra.gmra.mrb[0].mxu1 %v1604_v43 }
 0x1db   : > { %821 = vmatprep.mubr.bf16.mxu0 %v1607_v44  ;;  %853 = vmatprep.mubr.bf16.mxu1 %v1609_v45 }
 0x1e2   : > { %822 = vmatmul.mubr.bf16.gmra.mrb[4].mxu0 %v1611_v46  ;;  %854 = vmatmul.mubr.bf16.gmra.mrb[4].mxu1 %v1612_v47 }
 0x1e3   : > { %829 = vmatprep.mubr.bf16.mxu0 %v1613_v48  ;;  %861 = vmatprep.mubr.bf16.mxu1 %v1615_v49 }
 0x1ea   : > { %830 = vmatmul.mubr.bf16.gmra.mrb[8].mxu0 %v1617_v50  ;;  %862 = vmatmul.mubr.bf16.gmra.mrb[8].mxu1 %v1618_v51 }
 0x1eb   : > { %837 = vmatprep.mubr.bf16.mxu0 %v1619_v52  ;;  %869 = vmatprep.mubr.bf16.mxu1 %v1621_v53 }
 0x1f2   : > { %838 = vmatmul.mubr.bf16.gmra.mrb[12].mxu0 %v1623_v54  ;;  %870 = vmatmul.mubr.bf16.gmra.mrb[12].mxu1 %v1624_v55 }
 0x2ad   : > { %v1296_v56 = vpop.f32.mrb[0].mxu0  ;;  %v1320_v57 = vpop.f32.mrb[0].mxu1 }
 0x2ae   : > { %v1297_v59 = vpop.f32.mrb[1].mxu0  ;;  %v1321_v60 = vpop.f32.mrb[1].mxu1 }
 0x2af   : > { %v1298_v61 = vadd.f32 %v1297_v59, %v1296_v56  ;;  %v1322_v62 = vadd.f32 %v1321_v60, %v1320_v57  ;;  %v1299_v63 = vpop.f32.mrb[2].mxu0  ;;  %v1323_v0 = vpop.f32.mrb[2].mxu1 }
 0x2b0   : > { %v1300_v1 = vpop.f32.mrb[3].mxu0  ;;  %v1324_v2 = vpop.f32.mrb[3].mxu1 }
 0x2b1   : > { %v816_v3 = vadd.f32 %v1298_v61, %v2171_v58  ;;  %v848_v4 = vadd.f32 %v1322_v62, %v2171_v58  ;;  %v1301_v5 = vadd.f32 %v1300_v1, %v1299_v63  ;;  %v1325_v6 = vadd.f32 %v1324_v2, %v1323_v0 }
 0x2b3   : > { %v878_v7 = vmax.f32 %v816_v3, 0.0  ;;  %v886_v8 = vmax.f32 %v848_v4, 0.0  ;;  %v819_v9 = vadd.f32 %v1301_v5, %v2171_v58  ;;  %v851_v10 = vadd.f32 %v1325_v6, %v2171_v58 }
 0x2b5   : > { %895 = vst [vmem:[%s2179_s7] sm:$0xff] %v878_v7  ;;  %903 = vst [vmem:[%s2179_s7 + $0x40] sm:$0xff] %v886_v8  ;;  %v879_v11 = vmax.f32 %v819_v9, 0.0  ;;  %v887_v12 = vmax.f32 %v851_v10, 0.0  ;;  %v1302_v13 = vpop.f32.mrb[4].mxu0  ;;  %v1326_v14 = vpop.f32.mrb[4].mxu1 }
 0x2b6   : > { %v1303_v15 = vpop.f32.mrb[5].mxu0  ;;  %v1327_v16 = vpop.f32.mrb[5].mxu1 }
 0x2b7   : > { %896 = vst [vmem:[%s2179_s7 + $0x8] sm:$0xff] %v879_v11  ;;  %904 = vst [vmem:[%s2179_s7 + $0x48] sm:$0xff] %v887_v12  ;;  %v1304_v17 = vadd.f32 %v1303_v15, %v1302_v13  ;;  %v1328_v18 = vadd.f32 %v1327_v16, %v1326_v14  ;;  %v1305_v19 = vpop.f32.mrb[6].mxu0  ;;  %v1329_v20 = vpop.f32.mrb[6].mxu1 }
 0x2b8   : > { %v1306_v21 = vpop.f32.mrb[7].mxu0  ;;  %v1330_v22 = vpop.f32.mrb[7].mxu1 }
 0x2b9   : > { %v824_v23 = vadd.f32 %v1304_v17, %v2171_v58  ;;  %v856_v24 = vadd.f32 %v1328_v18, %v2171_v58  ;;  %v1307_v25 = vadd.f32 %v1306_v21, %v1305_v19  ;;  %v1331_v26 = vadd.f32 %v1330_v22, %v1329_v20 }
 0x2bb   : > { %v880_v27 = vmax.f32 %v824_v23, 0.0  ;;  %v888_v28 = vmax.f32 %v856_v24, 0.0  ;;  %v827_v29 = vadd.f32 %v1307_v25, %v2171_v58  ;;  %v859_v30 = vadd.f32 %v1331_v26, %v2171_v58 }
 0x2bd   : > { %897 = vst [vmem:[%s2179_s7 + $0x10] sm:$0xff] %v880_v27  ;;  %905 = vst [vmem:[%s2179_s7 + $0x50] sm:$0xff] %v888_v28  ;;  %v881_v31 = vmax.f32 %v827_v29, 0.0  ;;  %v889_v32 = vmax.f32 %v859_v30, 0.0  ;;  %v1308_v33 = vpop.f32.mrb[8].mxu0  ;;  %v1332_v34 = vpop.f32.mrb[8].mxu1 }
 0x2be   : > { %v1309_v35 = vpop.f32.mrb[9].mxu0  ;;  %v1333_v36 = vpop.f32.mrb[9].mxu1 }
 0x2bf   : > { %898 = vst [vmem:[%s2179_s7 + $0x18] sm:$0xff] %v881_v31  ;;  %906 = vst [vmem:[%s2179_s7 + $0x58] sm:$0xff] %v889_v32  ;;  %v1310_v37 = vadd.f32 %v1309_v35, %v1308_v33  ;;  %v1334_v38 = vadd.f32 %v1333_v36, %v1332_v34  ;;  %v1311_v39 = vpop.f32.mrb[10].mxu0  ;;  %v1335_v40 = vpop.f32.mrb[10].mxu1 }
 0x2c0   : > { %v1312_v41 = vpop.f32.mrb[11].mxu0  ;;  %v1336_v42 = vpop.f32.mrb[11].mxu1 }
 0x2c1   : > { %v832_v43 = vadd.f32 %v1310_v37, %v2171_v58  ;;  %v864_v44 = vadd.f32 %v1334_v38, %v2171_v58  ;;  %v1313_v45 = vadd.f32 %v1312_v41, %v1311_v39  ;;  %v1337_v46 = vadd.f32 %v1336_v42, %v1335_v40 }
 0x2c3   : > { %v882_v47 = vmax.f32 %v832_v43, 0.0  ;;  %v890_v48 = vmax.f32 %v864_v44, 0.0  ;;  %v835_v49 = vadd.f32 %v1313_v45, %v2171_v58  ;;  %v867_v50 = vadd.f32 %v1337_v46, %v2171_v58 }
 0x2c5   : > { %899 = vst [vmem:[%s2179_s7 + $0x20] sm:$0xff] %v882_v47  ;;  %907 = vst [vmem:[%s2179_s7 + $0x60] sm:$0xff] %v890_v48  ;;  %v883_v51 = vmax.f32 %v835_v49, 0.0  ;;  %v891_v52 = vmax.f32 %v867_v50, 0.0  ;;  %v1314_v53 = vpop.f32.mrb[12].mxu0  ;;  %v1338_v54 = vpop.f32.mrb[12].mxu1 }
 0x2c6   : > { %v1315_v55 = vpop.f32.mrb[13].mxu0  ;;  %v1339_v56 = vpop.f32.mrb[13].mxu1 }
 0x2c7   : > { %900 = vst [vmem:[%s2179_s7 + $0x28] sm:$0xff] %v883_v51  ;;  %908 = vst [vmem:[%s2179_s7 + $0x68] sm:$0xff] %v891_v52  ;;  %v1316_v57 = vadd.f32 %v1315_v55, %v1314_v53  ;;  %v1340_v59 = vadd.f32 %v1339_v56, %v1338_v54  ;;  %v1317_v60 = vpop.f32.mrb[14].mxu0  ;;  %v1341_v61 = vpop.f32.mrb[14].mxu1 }
 0x2c8   : > { %v1318_v62 = vpop.f32.mrb[15].mxu0  ;;  %v1342_v63 = vpop.f32.mrb[15].mxu1 }
 0x2c9   : > { %v840_v0 = vadd.f32 %v1316_v57, %v2171_v58  ;;  %v872_v1 = vadd.f32 %v1340_v59, %v2171_v58  ;;  %v1319_v2 = vadd.f32 %v1318_v62, %v1317_v60  ;;  %v1343_v3 = vadd.f32 %v1342_v63, %v1341_v61 }
 0x2cb   : > { %v884_v4 = vmax.f32 %v840_v0, 0.0  ;;  %v892_v5 = vmax.f32 %v872_v1, 0.0  ;;  %v843_v6 = vadd.f32 %v1319_v2, %v2171_v58  ;;  %v875_v7 = vadd.f32 %v1343_v3, %v2171_v58 }
 0x2cd   : > { %901 = vst [vmem:[%s2179_s7 + $0x30] sm:$0xff] %v884_v4  ;;  %909 = vst [vmem:[%s2179_s7 + $0x70] sm:$0xff] %v892_v5  ;;  %v885_v8 = vmax.f32 %v843_v6, 0.0  ;;  %v893_v9 = vmax.f32 %v875_v7, 0.0 }
 0x2cf   : > { %902 = vst [vmem:[%s2179_s7 + $0x38] sm:$0xff] %v885_v8  ;;  %910 = vst [vmem:[%s2179_s7 + $0x78] sm:$0xff] %v893_v9 }
 0x2d0 PF: > { %p1249_p12 = scmp.ne.s32.totalorder %s1799_s22, 2 }
 0x2d1   : > { %v940_v10 = vld [vmem:[%s2106_s23] sm:$0xff] (!%p1249_p12)  ;;  %v941_v58 = vld [vmem:[%s2106_s23 + $0x8] sm:$0xff] (!%p1249_p12)  ;;  %v942_v11 = vld [vmem:[%s2106_s23 + $0x10] sm:$0xff] (!%p1249_p12)  ;;  %s2219_s22 = scalar_lea.vmem (!%p1249_p12), [#allocation2], %s1230_s30 }
 0x2d2   : > { %914 = sbr.rel (%p1249_p12) target bundleno = 982 (0x3d6), region = 64  ;;  %v956_v12 = vpack.c.bf16 (!%p1249_p12), %v941_v58, %v940_v10  ;;  %v943_v13 = vld [vmem:[%s2106_s23 + $0x18] sm:$0xff] (!%p1249_p12)  ;;  %v944_v15 = vld [vmem:[%s2106_s23 + $0x20] sm:$0xff] (!%p1249_p12)  ;;  %v945_v16 = vld [vmem:[%s2106_s23 + $0x28] sm:$0xff] (!%p1249_p12) }
 0x2d3   : > { %v957_v14 = vpack.c.bf16 (!%p1249_p12), %v943_v13, %v942_v11  ;;  %v958_v17 = vpack.c.bf16 (!%p1249_p12), %v945_v16, %v944_v15  ;;  %v946_v18 = vld [vmem:[%s2106_s23 + $0x30] sm:$0xff] (!%p1249_p12)  ;;  %v947_v21 = vld [vmem:[%s2106_s23 + $0x38] sm:$0xff] (!%p1249_p12)  ;;  %v948_v27 = vld [vmem:[%s2106_s23 + $0x40] sm:$0xff] (!%p1249_p12) }
 0x2d4   : > { %1408 = vmatprep.subr.bf16.mxu0 (!%p1249_p12), %v956_v12  ;;  %1472 = vmatprep.subr.bf16.mxu1 (!%p1249_p12), %v956_v12  ;;  %v959_v26 = vpack.c.bf16 (!%p1249_p12), %v947_v21, %v946_v18  ;;  %v949_v28 = vld [vmem:[%s2106_s23 + $0x48] sm:$0xff] (!%p1249_p12)  ;;  %v950_v30 = vld [vmem:[%s2106_s23 + $0x50] sm:$0xff] (!%p1249_p12)  ;;  %v951_v31 = vld [vmem:[%s2106_s23 + $0x58] sm:$0xff] (!%p1249_p12) }
 0x2d5   : > { %1409 = vmatpush3.bf16.msra.mxu0 (!%p1249_p12), %v956_v12  ;;  %1480 = vmatpush3.bf16.msra.mxu1 (!%p1249_p12), %v956_v12  ;;  %v960_v29 = vpack.c.bf16 (!%p1249_p12), %v949_v28, %v948_v27  ;;  %v961_v32 = vpack.c.bf16 (!%p1249_p12), %v951_v31, %v950_v30  ;;  %v952_v33 = vld [vmem:[%s2106_s23 + $0x60] sm:$0xff] (!%p1249_p12)  ;;  %v953_v34 = vld [vmem:[%s2106_s23 + $0x68] sm:$0xff] (!%p1249_p12)  ;;  %v954_v36 = vld [vmem:[%s2106_s23 + $0x70] sm:$0xff] (!%p1249_p12) }
 0x2d6   : > { %1410 = vmatprep.subr.bf16.mxu0 (!%p1249_p12), %v957_v14  ;;  %1473 = vmatprep.subr.bf16.mxu1 (!%p1249_p12), %v957_v14  ;;  %v916_v19 = vld [vmem:[%s2219_s22] sm:$0xff] (!%p1249_p12)  ;;  %v917_v20 = vld [vmem:[%s2219_s22 + $0x8] sm:$0xff] (!%p1249_p12)  ;;  %v962_v35 = vpack.c.bf16 (!%p1249_p12), %v953_v34, %v952_v33  ;;  %v955_v37 = vld [vmem:[%s2106_s23 + $0x78] sm:$0xff] (!%p1249_p12) }
 0x2d7   : > { %v932_v22 = vpack.c.bf16 (!%p1249_p12), %v917_v20, %v916_v19  ;;  %v924_v23 = vld [vmem:[%s2219_s22 + $0x40] sm:$0xff] (!%p1249_p12)  ;;  %v925_v24 = vld [vmem:[%s2219_s22 + $0x48] sm:$0xff] (!%p1249_p12)  ;;  %v963_v38 = vpack.c.bf16 (!%p1249_p12), %v955_v37, %v954_v36  ;;  %v918_v39 = vld [vmem:[%s2219_s22 + $0x10] sm:$0xff] (!%p1249_p12) }
 0x2d8   : > { %v936_v25 = vpack.c.bf16 (!%p1249_p12), %v925_v24, %v924_v23  ;;  %v919_v40 = vld [vmem:[%s2219_s22 + $0x18] sm:$0xff] (!%p1249_p12)  ;;  %v926_v41 = vld [vmem:[%s2219_s22 + $0x50] sm:$0xff] (!%p1249_p12)  ;;  %v920_v43 = vld [vmem:[%s2219_s22 + $0x20] sm:$0xff] (!%p1249_p12) }
 0x2d9   : > { %1411 = vmatpush3.bf16.msra.mxu0 %v957_v14  ;;  %1481 = vmatpush3.bf16.msra.mxu1 %v957_v14  ;;  %v927_v42 = vld [vmem:[%s2219_s22 + $0x58] sm:$0xff]  ;;  %v921_v44 = vld [vmem:[%s2219_s22 + $0x28] sm:$0xff]  ;;  %v928_v45 = vld [vmem:[%s2219_s22 + $0x60] sm:$0xff]  ;;  %v933_v47 = vpack.c.bf16 %v919_v40, %v918_v39 }
 0x2da   : > { %1412 = vmatprep.subr.bf16.mxu0 %v958_v17  ;;  %1474 = vmatprep.subr.bf16.mxu1 %v958_v17  ;;  %v929_v46 = vld [vmem:[%s2219_s22 + $0x68] sm:$0xff]  ;;  %v937_v48 = vpack.c.bf16 %v927_v42, %v926_v41  ;;  %v934_v49 = vpack.c.bf16 %v921_v44, %v920_v43  ;;  %v922_v51 = vld [vmem:[%s2219_s22 + $0x30] sm:$0xff]  ;;  %v923_v52 = vld [vmem:[%s2219_s22 + $0x38] sm:$0xff] }
 0x2db   : > { %1424 = vmatprep.mubr.bf16.mxu0 %v932_v22  ;;  %1432 = vmatprep.mubr.bf16.mxu1 %v936_v25  ;;  %v938_v50 = vpack.c.bf16 %v929_v46, %v928_v45  ;;  %v930_v53 = vld [vmem:[%s2219_s22 + $0x70] sm:$0xff]  ;;  %v931_v54 = vld [vmem:[%s2219_s22 + $0x78] sm:$0xff]  ;;  %v935_v55 = vpack.c.bf16 %v923_v52, %v922_v51  ;;  %v1250_v57 = vld [vmem:[%s2123_s18] ss:$0 sm:$0xff] }
 0x2dc   : > { %v939_v56 = vpack.c.bf16 %v931_v54, %v930_v53 }
 0x2dd   : > { %1413 = vmatpush3.bf16.msra.mxu0 %v958_v17  ;;  %1482 = vmatpush3.bf16.msra.mxu1 %v958_v17 }
 0x2de   : > { %1414 = vmatprep.subr.bf16.mxu0 %v959_v26  ;;  %1475 = vmatprep.subr.bf16.mxu1 %v959_v26 }
 0x2e1   : > { %1415 = vmatpush3.bf16.msra.mxu0 %v959_v26  ;;  %1483 = vmatpush3.bf16.msra.mxu1 %v959_v26 }
 0x2e2   : > { %1416 = vmatprep.subr.bf16.mxu0 %v960_v29  ;;  %1476 = vmatprep.subr.bf16.mxu1 %v960_v29 }
 0x2e5   : > { %1417 = vmatpush3.bf16.msra.mxu0 %v960_v29  ;;  %1484 = vmatpush3.bf16.msra.mxu1 %v960_v29 }
 0x2e6   : > { %1418 = vmatprep.subr.bf16.mxu0 %v961_v32  ;;  %1477 = vmatprep.subr.bf16.mxu1 %v961_v32 }
 0x2e9   : > { %1419 = vmatpush3.bf16.msra.mxu0 %v961_v32  ;;  %1485 = vmatpush3.bf16.msra.mxu1 %v961_v32 }
 0x2ea   : > { %1420 = vmatprep.subr.bf16.mxu0 %v962_v35  ;;  %1478 = vmatprep.subr.bf16.mxu1 %v962_v35 }
 0x2ed   : > { %1421 = vmatpush3.bf16.msra.mxu0 %v962_v35  ;;  %1486 = vmatpush3.bf16.msra.mxu1 %v962_v35 }
 0x2ee   : > { %1422 = vmatprep.subr.bf16.mxu0 %v963_v38  ;;  %1479 = vmatprep.subr.bf16.mxu1 %v963_v38 }
 0x2f1   : > { %1423 = vmatpush3.bf16.msra.mxu0 %v963_v38  ;;  %1487 = vmatpush3.bf16.msra.mxu1 %v963_v38 }
 0x2f4   : > { %1425 = vmatmul.mubr.bf16.vlgmr.msra.gmra.mrb[0].mxu0 %v933_v47  ;;  %1433 = vmatmul.mubr.bf16.vlgmr.msra.gmra.mrb[0].mxu1 %v937_v48 }
 0x2f5   : > { %1428 = vmatprep.mubr.bf16.mxu0 %v934_v49  ;;  %1436 = vmatprep.mubr.bf16.mxu1 %v938_v50 }
 0x2fc   : > { %1429 = vmatmul.mubr.bf16.gmra.mrb[4].mxu0 %v935_v55  ;;  %1437 = vmatmul.mubr.bf16.gmra.mrb[4].mxu1 %v939_v56 }
 0x3c7   : > { %v1426_v59 = vpop.f32.mrb[0].mxu0  ;;  %v1434_v60 = vpop.f32.mrb[0].mxu1 }
 0x3c8   : > { %v1014_v61 = vadd.f32 %v1426_v59, %v1250_v57  ;;  %v1046_v62 = vadd.f32 %v1434_v60, %v1250_v57  ;;  %v1005_v63 = vpop.f32.mrb[1].mxu0  ;;  %v1037_v0 = vpop.f32.mrb[1].mxu1 }
 0x3c9   : > { %v1006_v1 = vadd.f32 %v1250_v57, %v1005_v63  ;;  %v1038_v2 = vadd.f32 %v1250_v57, %v1037_v0  ;;  %v1427_v3 = vpop.f32.mrb[2].mxu0  ;;  %v1435_v4 = vpop.f32.mrb[2].mxu1 }
 0x3ca   : > { %1070 = vst [vmem:[%s2131_s9 + $0x10] sm:$0xff] %v1014_v61  ;;  %1078 = vst [vmem:[%s2131_s9 + $0x50] sm:$0xff] %v1046_v62  ;;  %v1017_v5 = vadd.f32 %v1427_v3, %v1250_v57  ;;  %v1049_v6 = vadd.f32 %v1435_v4, %v1250_v57  ;;  %v1008_v7 = vpop.f32.mrb[3].mxu0  ;;  %v1040_v8 = vpop.f32.mrb[3].mxu1 }
 0x3cb   : > { %1068 = vst [vmem:[%s2131_s9] sm:$0xff] %v1006_v1  ;;  %1076 = vst [vmem:[%s2131_s9 + $0x40] sm:$0xff] %v1038_v2  ;;  %v1009_v9 = vadd.f32 %v1250_v57, %v1008_v7  ;;  %v1041_v10 = vadd.f32 %v1250_v57, %v1040_v8 }
 0x3cc   : > { %1071 = vst [vmem:[%s2131_s9 + $0x18] sm:$0xff] %v1017_v5  ;;  %1079 = vst [vmem:[%s2131_s9 + $0x58] sm:$0xff] %v1049_v6 }
 0x3cd   : > { %1069 = vst [vmem:[%s2131_s9 + $0x8] sm:$0xff] %v1009_v9  ;;  %1077 = vst [vmem:[%s2131_s9 + $0x48] sm:$0xff] %v1041_v10 }
 0x3cf   : > { %v1430_v58 = vpop.f32.mrb[4].mxu0  ;;  %v1438_v11 = vpop.f32.mrb[4].mxu1 }
 0x3d0   : > { %v1030_v12 = vadd.f32 %v1430_v58, %v1250_v57  ;;  %v1062_v13 = vadd.f32 %v1438_v11, %v1250_v57  ;;  %v1021_v14 = vpop.f32.mrb[5].mxu0  ;;  %v1053_v15 = vpop.f32.mrb[5].mxu1 }
 0x3d1   : > { %v1022_v16 = vadd.f32 %v1250_v57, %v1021_v14  ;;  %v1054_v17 = vadd.f32 %v1250_v57, %v1053_v15  ;;  %v1431_v18 = vpop.f32.mrb[6].mxu0  ;;  %v1439_v19 = vpop.f32.mrb[6].mxu1 }
 0x3d2   : > { %1074 = vst [vmem:[%s2131_s9 + $0x30] sm:$0xff] %v1030_v12  ;;  %1082 = vst [vmem:[%s2131_s9 + $0x70] sm:$0xff] %v1062_v13  ;;  %v1033_v20 = vadd.f32 %v1431_v18, %v1250_v57  ;;  %v1065_v21 = vadd.f32 %v1439_v19, %v1250_v57  ;;  %v1024_v22 = vpop.f32.mrb[7].mxu0  ;;  %v1056_v23 = vpop.f32.mrb[7].mxu1 }
 0x3d3   : > { %1072 = vst [vmem:[%s2131_s9 + $0x20] sm:$0xff] %v1022_v16  ;;  %1080 = vst [vmem:[%s2131_s9 + $0x60] sm:$0xff] %v1054_v17  ;;  %v1025_v24 = vadd.f32 %v1250_v57, %v1024_v22  ;;  %v1057_v25 = vadd.f32 %v1250_v57, %v1056_v23 }
 0x3d4   : > { %1075 = vst [vmem:[%s2131_s9 + $0x38] sm:$0xff] %v1033_v20  ;;  %1083 = vst [vmem:[%s2131_s9 + $0x78] sm:$0xff] %v1065_v21 }
 0x3d5   : > { %1073 = vst [vmem:[%s2131_s9 + $0x28] sm:$0xff] %v1025_v24  ;;  %1081 = vst [vmem:[%s2131_s9 + $0x68] sm:$0xff] %v1057_v25 }
 0x3d6 PF: > { %s18_s25 = sadd.s32 1, %s1811_s25   ;;  %s2342_s21 = sld [smem:[#allocation12_spill]] }
 0x3d7   : > { %p15_p0 = scmp.ge.s32.totalorder %s18_s25, 8   ;;  %s2343_s29 = sld [smem:[#allocation13_spill]] }
 0x3d8   : > { %s2344_s15 = smov %s1775_s16  ;;  %s2345_s16 = smov %s1779_s17 }
 0x3d9   : > { %s2346_s17 = smov %s2019_s12  ;;  %s2347_s18 = smov %s1787_s19 }
 0x3da   : > { %s2348_s19 = smov %s1791_s20  ;;  %s2349_s20 = smov %s1929_s13 }
 0x3db   : > { %s2350_s22 = smov %s1807_s24  ;;  %s2351_s23 = smov %s2354_s26 }
 0x3dc   :  { %17 = sbr.rel (!%p15_p0) target bundleno = 12 (0xc), region = 112 }
 0x3dd   : > { %s2352_s24 = smov %s2343_s29 }
 0x3e3   :  { %1112 = vsyncpa [#allocation5], 1 }
 0x3e4   :  { %1114 = vsyncpa [#allocation5 + $0x1], 1 }
 0x3e5   :  { %1115 = vsyncpa [#allocation7], 1 }

</bundles_post_ra>
